<compile_context>
chip_gen: v7x
topology: tpu7x:2x2x1
jax: 0.10.0
libtpu: 0.0.40
codegen_flags: <defaults>
</compile_context>

<pallas_src>
import functools

import jax
import jax.numpy as jnp
import numpy as np
from jax.experimental import pallas as pl
from jax.experimental.pallas import tpu as pltpu


# ----------------------------- kernel helpers -----------------------------

def _layernorm(x, eps=1e-6):
    # nn.LayerNorm(hidden, elementwise_affine=False, eps=1e-6): biased variance.
    mu = jnp.mean(x, axis=-1, keepdims=True)
    var = jnp.mean((x - mu) ** 2, axis=-1, keepdims=True)
    return (x - mu) * jax.lax.rsqrt(var + eps)


def _gelu_tanh(x):
    # nn.GELU(approximate='tanh')
    c = np.float32(np.sqrt(2.0 / np.pi))
    return 0.5 * x * (1.0 + jnp.tanh(c * (x + 0.044715 * x * x * x)))


# ------------------------------- the kernel --------------------------------

def dit_block_kernel(x_tile_ref, x_full_ref, mod_ref,
                     wq_ref, bq_ref, wk_ref, bk_ref, wv_ref, bv_ref,
                     wprojh_ref, bproj_ref,
                     wfc1_ref, bfc1_ref, wfc2_ref, bfc2_ref,
                     out_ref,
                     k_scr, v_scr,
                     *, num_heads, approx_recip):
    """Grid = (batch, q_tile). One step processes one (TN, D) query tile."""
    H = num_heads
    TN, D = x_tile_ref.shape[1], x_tile_ref.shape[2]
    N = x_full_ref.shape[1]
    Hd = D // H
    wdt = wq_ref.dtype                      # MXU compute dtype (bf16 or f32)
    inv_sqrt_hd = np.float32(1.0 / np.sqrt(Hd))

    mod = mod_ref[0].astype(jnp.float32)    # (6, D), sublane slices below are cheap
    shift_msa, scale_msa, gate_msa = mod[0:1], mod[1:2], mod[2:3]
    shift_mlp, scale_mlp, gate_mlp = mod[3:4], mod[4:5], mod[5:6]

    def split_heads(t):                     # (rows, D) -> (H, rows, Hd)
        return jnp.stack([t[:, h * Hd:(h + 1) * Hd] for h in range(H)], axis=0)

    # ---- K / V for the whole sequence: computed once per batch element ----
    @pl.when(pl.program_id(1) == 0)
    def _compute_kv():
        xf = x_full_ref[0].astype(jnp.float32)                              # (N, D)
        hf = (_layernorm(xf) * (1.0 + scale_msa) + shift_msa).astype(wdt)
        k = jnp.dot(hf, wk_ref[...], preferred_element_type=jnp.float32) + bk_ref[...]
        v = jnp.dot(hf, wv_ref[...], preferred_element_type=jnp.float32) + bv_ref[...]
        k_scr[...] = split_heads(k).astype(wdt)                             # (H, N, Hd)
        v_scr[...] = split_heads(v).astype(wdt)

    # ---- attention branch for this query tile ----
    x = x_tile_ref[0].astype(jnp.float32)                                   # (TN, D)
    h1 = (_layernorm(x) * (1.0 + scale_msa) + shift_msa).astype(wdt)
    q = jnp.dot(h1, wq_ref[...], preferred_element_type=jnp.float32) + bq_ref[...]
    q3 = split_heads(q * inv_sqrt_hd).astype(wdt)                           # (H, TN, Hd)

    # logits: batched over heads, contracting head_dim (no explicit transpose)
    logits = jax.lax.dot_general(
        q3, k_scr[...], (((2,), (2,)), ((0,), (0,))),
        preferred_element_type=jnp.float32)                                 # (H, TN, N)
    m = jnp.max(logits, axis=-1, keepdims=True)
    p = jnp.exp(logits - m)
    denom = jnp.sum(p, axis=-1, keepdims=True)
    if approx_recip:
        p = p * pl.reciprocal(denom, approx=True)
    else:
        p = p / denom

    o3 = jax.lax.dot_general(
        p.astype(wdt), v_scr[...], (((2,), (1,)), ((0,), (0,))),
        preferred_element_type=jnp.float32)                                 # (H, TN, Hd)

    # per-head output projection summed over heads  ==  concat(heads) @ W_proj
    proj = jax.lax.dot_general(
        o3.astype(wdt), wprojh_ref[...], (((2,), (1,)), ((0,), (0,))),
        preferred_element_type=jnp.float32)                                 # (H, TN, D)
    attn = jnp.sum(proj, axis=0) + bproj_ref[...]                           # (TN, D)

    x1 = x + gate_msa * attn

    # ---- MLP branch ----
    h2 = (_layernorm(x1) * (1.0 + scale_mlp) + shift_mlp).astype(wdt)
    f = jnp.dot(h2, wfc1_ref[...], preferred_element_type=jnp.float32) + bfc1_ref[...]
    g = _gelu_tanh(f).astype(wdt)
    mlp = jnp.dot(g, wfc2_ref[...], preferred_element_type=jnp.float32) + bfc2_ref[...]

    out_ref[0] = (x1 + gate_mlp * mlp).astype(out_ref.dtype)


# ------------------------------- wrapper ------------------------------------

def _default_seq_tile(n):
    if n <= 256:
        return n
    for t in range(256, 7, -8):
        if n % t == 0:
            return t
    return n


def dit_block(x, c, params, *, num_heads,
              compute_dtype=jnp.bfloat16,
              seq_tile=None,
              approx_softmax_recip=True,
              vmem_limit_bytes=48 * 1024 * 1024):
    B, N, D = x.shape
    H = num_heads
    assert D % H == 0, "hidden_size must be divisible by num_heads"
    Hd = D // H
    (w_ada, b_ada, w_qkv, b_qkv, w_proj, b_proj,
     w_fc1, b_fc1, w_fc2, b_fc2) = params

    # --- adaLN modulation outside the kernel (tiny (B,D)x(D,6D) matmul) ---
    c32 = c.astype(jnp.float32)
    silu_c = c32 * jax.nn.sigmoid(c32)
    mod = silu_c @ w_ada.astype(jnp.float32) + b_ada.astype(jnp.float32)   # (B, 6D)
    mod = mod.reshape(B, 6, D)

    # --- weight prep: split QKV, per-head proj, compute dtype cast ---
    wdt = compute_dtype
    w_q = w_qkv[:, 0 * D:1 * D].astype(wdt)
    w_k = w_qkv[:, 1 * D:2 * D].astype(wdt)
    w_v = w_qkv[:, 2 * D:3 * D].astype(wdt)
    b_q = b_qkv[:, 0 * D:1 * D].astype(jnp.float32)
    b_k = b_qkv[:, 1 * D:2 * D].astype(jnp.float32)
    b_v = b_qkv[:, 2 * D:3 * D].astype(jnp.float32)
    w_proj_h = w_proj.astype(wdt).reshape(H, Hd, D)        # per-head slabs of W_proj
    b_proj32 = b_proj.astype(jnp.float32)
    w_fc1_c = w_fc1.astype(wdt)
    b_fc1_32 = b_fc1.astype(jnp.float32)
    w_fc2_c = w_fc2.astype(wdt)
    b_fc2_32 = b_fc2.astype(jnp.float32)

    TN = seq_tile if seq_tile is not None else _default_seq_tile(N)
    if N % TN != 0:
        raise ValueError(f"seq_tile={TN} must divide N={N}")
    NT = N // TN

    def wspec(arr):
        nd = arr.ndim
        return pl.BlockSpec(arr.shape, lambda b, n, _nd=nd: (0,) * _nd)

    kernel = functools.partial(dit_block_kernel, num_heads=H,
                               approx_recip=approx_softmax_recip)

    grid_spec = pltpu.PrefetchScalarGridSpec(
        num_scalar_prefetch=0,
        grid=(B, NT),
        in_specs=[
            pl.BlockSpec((1, TN, D), lambda b, n: (b, n, 0)),   # x, current q tile
            pl.BlockSpec((1, N, D), lambda b, n: (b, 0, 0)),    # x, full seq (K/V)
            pl.BlockSpec((1, 6, D), lambda b, n: (b, 0, 0)),    # adaLN modulation
            wspec(w_q), wspec(b_q),
            wspec(w_k), wspec(b_k),
            wspec(w_v), wspec(b_v),
            wspec(w_proj_h), wspec(b_proj32),
            wspec(w_fc1_c), wspec(b_fc1_32),
            wspec(w_fc2_c), wspec(b_fc2_32),
        ],
        out_specs=pl.BlockSpec((1, TN, D), lambda b, n: (b, n, 0)),
        scratch_shapes=[pltpu.VMEM((H, N, Hd), wdt),            # K (resident per batch)
                        pltpu.VMEM((H, N, Hd), wdt)],           # V
    )

    return pl.pallas_call(
        kernel,
        out_shape=jax.ShapeDtypeStruct((B, N, D), x.dtype),
        grid_spec=grid_spec,
        compiler_params=pltpu.CompilerParams(
            # batch axis is parallel (megacore / v7x 2-TC); q-tile axis carries the
            # K/V scratch dependency, so it must stay "arbitrary".
            dimension_semantics=("parallel", "arbitrary"),
            vmem_limit_bytes=vmem_limit_bytes,
        ),
    )(x, x, mod,
      w_q, b_q, w_k, b_k, w_v, b_v,
      w_proj_h, b_proj32, w_fc1_c, b_fc1_32, w_fc2_c, b_fc2_32)


# ------------------------- pure-JAX reference ------------------------------

def dit_block_ref(x, c, params, *, num_heads):
    (w_ada, b_ada, w_qkv, b_qkv, w_proj, b_proj,
     w_fc1, b_fc1, w_fc2, b_fc2) = params
    B, N, D = x.shape
    Hd = D // num_heads
    scale = 1.0 / np.sqrt(Hd)

    silu_c = c * jax.nn.sigmoid(c)
    mod = silu_c @ w_ada + b_ada
    s_msa, sc_msa, g_msa, s_mlp, sc_mlp, g_mlp = jnp.split(mod, 6, axis=1)

    h1 = _layernorm(x) * (1.0 + sc_msa[:, None, :]) + s_msa[:, None, :]
    qkv = h1 @ w_qkv + b_qkv
    qkv = qkv.reshape(B, N, 3, num_heads, Hd)
    q, k, v = qkv[:, :, 0], qkv[:, :, 1], qkv[:, :, 2]      # (B, N, H, Hd)
    logits = jnp.einsum('bqhd,bkhd->bhqk', q, k) * scale
    p = jax.nn.softmax(logits, axis=-1)
    attn = jnp.einsum('bhqk,bkhd->bqhd', p, v).reshape(B, N, D)
    attn = attn @ w_proj + b_proj
    x1 = x + g_msa[:, None, :] * attn

    h2 = _layernorm(x1) * (1.0 + sc_mlp[:, None, :]) + s_mlp[:, None, :]
    mlp = _gelu_tanh(h2 @ w_fc1 + b_fc1) @ w_fc2 + b_fc2
    return x1 + g_mlp[:, None, :] * mlp


# --------------------------------- main -------------------------------------

if __name__ == "__main__":
    B, N, D = 2, 16, 32        # batch, tokens, hidden_size (small test shapes)
    num_heads = 4
    mlp_hidden = int(D * 4.0)

    key = jax.random.PRNGKey(0)
    keys = jax.random.split(key, 12)

    def wgen(k, shape, fan_in):
        return (jax.random.normal(k, shape, jnp.float32) / np.sqrt(fan_in)).astype(jnp.float32)

    # Deterministic synthetic parameters (biases stored as (1, dim)).
    w_ada = wgen(keys[0], (D, 6 * D), D)
    b_ada = 0.01 * jax.random.normal(keys[1], (1, 6 * D), jnp.float32)
    w_qkv = wgen(keys[2], (D, 3 * D), D)
    b_qkv = 0.01 * jax.random.normal(keys[3], (1, 3 * D), jnp.float32)
    w_proj = wgen(keys[4], (D, D), D)
    b_proj = 0.01 * jax.random.normal(keys[5], (1, D), jnp.float32)
    w_fc1 = wgen(keys[6], (D, mlp_hidden), D)
    b_fc1 = 0.01 * jax.random.normal(keys[7], (1, mlp_hidden), jnp.float32)
    w_fc2 = wgen(keys[8], (mlp_hidden, D), mlp_hidden)
    b_fc2 = 0.01 * jax.random.normal(keys[9], (1, D), jnp.float32)
    params = (w_ada, b_ada, w_qkv, b_qkv, w_proj, b_proj,
              w_fc1, b_fc1, w_fc2, b_fc2)

    x = jax.random.normal(keys[10], (B, N, D), jnp.float32)
    c = jax.random.normal(keys[11], (B, D), jnp.float32)

    ref = jax.block_until_ready(dit_block_ref(x, c, params, num_heads=num_heads))

    # 1) f32 path, exact softmax normalization, 2 query tiles (exercises K/V scratch
    #    reuse across the q-tile grid axis). Tight correctness check.
    out_f32 = jax.block_until_ready(
        dit_block(x, c, params, num_heads=num_heads,
                  compute_dtype=jnp.float32, seq_tile=8,
                  approx_softmax_recip=False))
    np.testing.assert_allclose(np.asarray(out_f32), np.asarray(ref),
                               rtol=5e-4, atol=5e-4)

    # 2) production config: bf16 weights/operands on the MXU (f32 accumulation) and
    #    EUP approximate reciprocal in the softmax. Loose sanity check vs f32 ref.
    out_bf16 = jax.block_until_ready(
        dit_block(x, c, params, num_heads=num_heads,
                  compute_dtype=jnp.bfloat16, seq_tile=8,
                  approx_softmax_recip=True))
    np.testing.assert_allclose(np.asarray(out_bf16), np.asarray(ref),
                               rtol=1e-1, atol=1e-1)

    print("KERNEL_OK")
</pallas_src>

<mosaic_0001>
module attributes {stable_mosaic.version = 11 : i64} {
  func.func @dit_block_kernel(%arg0: i32, %arg1: i32, %arg2: memref<1x8x32xf32, #tpu.memory_space<vmem>>, %arg3: memref<1x16x32xf32, #tpu.memory_space<vmem>>, %arg4: memref<1x6x32xf32, #tpu.memory_space<vmem>>, %arg5: memref<32x32xf32, #tpu.memory_space<vmem>>, %arg6: memref<1x32xf32, #tpu.memory_space<vmem>>, %arg7: memref<32x32xf32, #tpu.memory_space<vmem>>, %arg8: memref<1x32xf32, #tpu.memory_space<vmem>>, %arg9: memref<32x32xf32, #tpu.memory_space<vmem>>, %arg10: memref<1x32xf32, #tpu.memory_space<vmem>>, %arg11: memref<4x8x32xf32, #tpu.memory_space<vmem>>, %arg12: memref<1x32xf32, #tpu.memory_space<vmem>>, %arg13: memref<32x128xf32, #tpu.memory_space<vmem>>, %arg14: memref<1x128xf32, #tpu.memory_space<vmem>>, %arg15: memref<128x32xf32, #tpu.memory_space<vmem>>, %arg16: memref<1x32xf32, #tpu.memory_space<vmem>>, %arg17: memref<1x8x32xf32, #tpu.memory_space<vmem>>, %arg18: memref<4x16x8xf32, #tpu.memory_space<vmem>>, %arg19: memref<4x16x8xf32, #tpu.memory_space<vmem>>) attributes {dimension_semantics = [#tpu.dimension_semantics<parallel>, #tpu.dimension_semantics<arbitrary>], iteration_bounds = array<i64: 2, 2>, scalar_prefetch = 0 : i64, scratch_operands = 2 : i64, tpu.core_type = #tpu.core_type<tc>, window_params = [{transform_indices = @transform_0, window_bounds = array<i64: 1, 8, 32>}, {transform_indices = @transform_1, window_bounds = array<i64: 1, 16, 32>}, {transform_indices = @transform_2, window_bounds = array<i64: 1, 6, 32>}, {pipeline_mode = #tpu.pipeline_mode<synchronous>, transform_indices = @transform_3, window_bounds = array<i64: 32, 32>}, {pipeline_mode = #tpu.pipeline_mode<synchronous>, transform_indices = @transform_4, window_bounds = array<i64: 1, 32>}, {pipeline_mode = #tpu.pipeline_mode<synchronous>, transform_indices = @transform_5, window_bounds = array<i64: 32, 32>}, {pipeline_mode = #tpu.pipeline_mode<synchronous>, transform_indices = @transform_6, window_bounds = array<i64: 1, 32>}, {pipeline_mode = #tpu.pipeline_mode<synchronous>, transform_indices = @transform_7, window_bounds = array<i64: 32, 32>}, {pipeline_mode = #tpu.pipeline_mode<synchronous>, transform_indices = @transform_8, window_bounds = array<i64: 1, 32>}, {pipeline_mode = #tpu.pipeline_mode<synchronous>, transform_indices = @transform_9, window_bounds = array<i64: 4, 8, 32>}, {pipeline_mode = #tpu.pipeline_mode<synchronous>, transform_indices = @transform_10, window_bounds = array<i64: 1, 32>}, {pipeline_mode = #tpu.pipeline_mode<synchronous>, transform_indices = @transform_11, window_bounds = array<i64: 32, 128>}, {pipeline_mode = #tpu.pipeline_mode<synchronous>, transform_indices = @transform_12, window_bounds = array<i64: 1, 128>}, {pipeline_mode = #tpu.pipeline_mode<synchronous>, transform_indices = @transform_13, window_bounds = array<i64: 128, 32>}, {pipeline_mode = #tpu.pipeline_mode<synchronous>, transform_indices = @transform_14, window_bounds = array<i64: 1, 32>}, {transform_indices = @transform_15, window_bounds = array<i64: 1, 8, 32>}]} {
    %c0 = arith.constant 0 : index
    %c0_0 = arith.constant 0 : index
    %c0_1 = arith.constant 0 : index
    %0 = vector.load %arg4[%c0, %c0_0, %c0_1] : memref<1x6x32xf32, #tpu.memory_space<vmem>>, vector<1x6x32xf32>
    %1 = vector.shape_cast %0 : vector<1x6x32xf32> to vector<6x32xf32>
    %2 = vector.extract_strided_slice %1 {offsets = [0, 0], sizes = [1, 32], strides = [1, 1]} : vector<6x32xf32> to vector<1x32xf32>
    %3 = vector.extract_strided_slice %1 {offsets = [1, 0], sizes = [1, 32], strides = [1, 1]} : vector<6x32xf32> to vector<1x32xf32>
    %4 = vector.extract_strided_slice %1 {offsets = [2, 0], sizes = [1, 32], strides = [1, 1]} : vector<6x32xf32> to vector<1x32xf32>
    %5 = vector.extract_strided_slice %1 {offsets = [3, 0], sizes = [1, 32], strides = [1, 1]} : vector<6x32xf32> to vector<1x32xf32>
    %6 = vector.extract_strided_slice %1 {offsets = [4, 0], sizes = [1, 32], strides = [1, 1]} : vector<6x32xf32> to vector<1x32xf32>
    %7 = vector.extract_strided_slice %1 {offsets = [5, 0], sizes = [1, 32], strides = [1, 1]} : vector<6x32xf32> to vector<1x32xf32>
    %c0_i32 = arith.constant 0 : i32
    %8 = arith.cmpi eq, %arg1, %c0_i32 : i32
    %9 = arith.extui %8 : i1 to i32
    %c0_i32_2 = arith.constant 0 : i32
    %10 = arith.cmpi ne, %9, %c0_i32_2 : i32
    scf.if %10 {
      %c0_57 = arith.constant 0 : index
      %c0_58 = arith.constant 0 : index
      %c0_59 = arith.constant 0 : index
      %128 = vector.load %arg3[%c0_57, %c0_58, %c0_59] : memref<1x16x32xf32, #tpu.memory_space<vmem>>, vector<1x16x32xf32>
      %129 = vector.shape_cast %128 : vector<1x16x32xf32> to vector<16x32xf32>
      %cst_60 = arith.constant dense<0.000000e+00> : vector<16xf32>
      %130 = vector.multi_reduction <add>, %129, %cst_60 [1] : vector<16x32xf32> to vector<16xf32>
      %131 = vector.shape_cast %130 : vector<16xf32> to vector<16x1xf32>
      %cst_61 = arith.constant 3.200000e+01 : f32
      %132 = vector.broadcast %cst_61 : f32 to vector<16x1xf32>
      %133 = arith.divf %131, %132 : vector<16x1xf32>
      %134 = vector.broadcast %133 : vector<16x1xf32> to vector<16x32xf32>
      %135 = arith.subf %129, %134 : vector<16x32xf32>
      %136 = arith.mulf %135, %135 : vector<16x32xf32>
      %cst_62 = arith.constant dense<0.000000e+00> : vector<16xf32>
      %137 = vector.multi_reduction <add>, %136, %cst_62 [1] : vector<16x32xf32> to vector<16xf32>
      %138 = vector.shape_cast %137 : vector<16xf32> to vector<16x1xf32>
      %cst_63 = arith.constant 3.200000e+01 : f32
      %139 = vector.broadcast %cst_63 : f32 to vector<16x1xf32>
      %140 = arith.divf %138, %139 : vector<16x1xf32>
      %141 = vector.broadcast %133 : vector<16x1xf32> to vector<16x32xf32>
      %142 = arith.subf %129, %141 : vector<16x32xf32>
      %cst_64 = arith.constant 9.99999997E-7 : f32
      %143 = vector.broadcast %cst_64 : f32 to vector<16x1xf32>
      %144 = arith.addf %140, %143 : vector<16x1xf32>
      %145 = math.rsqrt %144 : vector<16x1xf32>
      %146 = vector.broadcast %145 : vector<16x1xf32> to vector<16x32xf32>
      %147 = arith.mulf %142, %146 : vector<16x32xf32>
      %cst_65 = arith.constant 1.000000e+00 : f32
      %148 = vector.broadcast %cst_65 : f32 to vector<1x32xf32>
      %149 = arith.addf %148, %3 : vector<1x32xf32>
      %150 = vector.broadcast %149 : vector<1x32xf32> to vector<16x32xf32>
      %151 = arith.mulf %147, %150 : vector<16x32xf32>
      %152 = vector.broadcast %2 : vector<1x32xf32> to vector<16x32xf32>
      %153 = arith.addf %151, %152 : vector<16x32xf32>
      %c0_66 = arith.constant 0 : index
      %c0_67 = arith.constant 0 : index
      %154 = vector.load %arg7[%c0_66, %c0_67] : memref<32x32xf32, #tpu.memory_space<vmem>>, vector<32x32xf32>
      %cst_68 = arith.constant dense<0.000000e+00> : vector<16x32xf32>
      %155 = tpu.matmul %153, %154, %cst_68 {dimension_numbers = #tpu.dot_dimension_numbers<[1], [0], [0], [1], [0, 0, 1, 1], [], []>} : vector<16x32xf32>, vector<32x32xf32>, vector<16x32xf32> -> vector<16x32xf32>
      %c0_69 = arith.constant 0 : index
      %c0_70 = arith.constant 0 : index
      %156 = vector.load %arg8[%c0_69, %c0_70] : memref<1x32xf32, #tpu.memory_space<vmem>>, vector<1x32xf32>
      %157 = vector.broadcast %156 : vector<1x32xf32> to vector<16x32xf32>
      %158 = arith.addf %155, %157 : vector<16x32xf32>
      %c0_71 = arith.constant 0 : index
      %c0_72 = arith.constant 0 : index
      %159 = vector.load %arg9[%c0_71, %c0_72] : memref<32x32xf32, #tpu.memory_space<vmem>>, vector<32x32xf32>
      %cst_73 = arith.constant dense<0.000000e+00> : vector<16x32xf32>
      %160 = tpu.matmul %153, %159, %cst_73 {dimension_numbers = #tpu.dot_dimension_numbers<[1], [0], [0], [1], [0, 0, 1, 1], [], []>} : vector<16x32xf32>, vector<32x32xf32>, vector<16x32xf32> -> vector<16x32xf32>
      %c0_74 = arith.constant 0 : index
      %c0_75 = arith.constant 0 : index
      %161 = vector.load %arg10[%c0_74, %c0_75] : memref<1x32xf32, #tpu.memory_space<vmem>>, vector<1x32xf32>
      %162 = vector.broadcast %161 : vector<1x32xf32> to vector<16x32xf32>
      %163 = arith.addf %160, %162 : vector<16x32xf32>
      %164 = vector.extract_strided_slice %158 {offsets = [0, 0], sizes = [16, 8], strides = [1, 1]} : vector<16x32xf32> to vector<16x8xf32>
      %165 = vector.extract_strided_slice %158 {offsets = [0, 8], sizes = [16, 8], strides = [1, 1]} : vector<16x32xf32> to vector<16x8xf32>
      %166 = vector.extract_strided_slice %158 {offsets = [0, 16], sizes = [16, 8], strides = [1, 1]} : vector<16x32xf32> to vector<16x8xf32>
      %167 = vector.extract_strided_slice %158 {offsets = [0, 24], sizes = [16, 8], strides = [1, 1]} : vector<16x32xf32> to vector<16x8xf32>
      %168 = vector.shape_cast %164 : vector<16x8xf32> to vector<1x16x8xf32>
      %169 = vector.shape_cast %165 : vector<16x8xf32> to vector<1x16x8xf32>
      %170 = vector.shape_cast %166 : vector<16x8xf32> to vector<1x16x8xf32>
      %171 = vector.shape_cast %167 : vector<16x8xf32> to vector<1x16x8xf32>
      %172 = tpu.concatenate %168, %169, %170, %171 in 0 : vector<1x16x8xf32>, vector<1x16x8xf32>, vector<1x16x8xf32>, vector<1x16x8xf32> -> vector<4x16x8xf32>
      %c0_76 = arith.constant 0 : index
      %c0_77 = arith.constant 0 : index
      %c0_78 = arith.constant 0 : index
      %173 = vector.load %arg18[%c0_76, %c0_77, %c0_78] : memref<4x16x8xf32, #tpu.memory_space<vmem>>, vector<4x16x8xf32>
      tpu.vector_store %arg18[%c0_76, %c0_77, %c0_78], %172 {strides = array<i32>} : memref<4x16x8xf32, #tpu.memory_space<vmem>>, vector<4x16x8xf32>,
      %174 = vector.extract_strided_slice %163 {offsets = [0, 0], sizes = [16, 8], strides = [1, 1]} : vector<16x32xf32> to vector<16x8xf32>
      %175 = vector.extract_strided_slice %163 {offsets = [0, 8], sizes = [16, 8], strides = [1, 1]} : vector<16x32xf32> to vector<16x8xf32>
      %176 = vector.extract_strided_slice %163 {offsets = [0, 16], sizes = [16, 8], strides = [1, 1]} : vector<16x32xf32> to vector<16x8xf32>
      %177 = vector.extract_strided_slice %163 {offsets = [0, 24], sizes = [16, 8], strides = [1, 1]} : vector<16x32xf32> to vector<16x8xf32>
      %178 = vector.shape_cast %174 : vector<16x8xf32> to vector<1x16x8xf32>
      %179 = vector.shape_cast %175 : vector<16x8xf32> to vector<1x16x8xf32>
      %180 = vector.shape_cast %176 : vector<16x8xf32> to vector<1x16x8xf32>
      %181 = vector.shape_cast %177 : vector<16x8xf32> to vector<1x16x8xf32>
      %182 = tpu.concatenate %178, %179, %180, %181 in 0 : vector<1x16x8xf32>, vector<1x16x8xf32>, vector<1x16x8xf32>, vector<1x16x8xf32> -> vector<4x16x8xf32>
      %c0_79 = arith.constant 0 : index
      %c0_80 = arith.constant 0 : index
      %c0_81 = arith.constant 0 : index
      %183 = vector.load %arg19[%c0_79, %c0_80, %c0_81] : memref<4x16x8xf32, #tpu.memory_space<vmem>>, vector<4x16x8xf32>
      tpu.vector_store %arg19[%c0_79, %c0_80, %c0_81], %182 {strides = array<i32>} : memref<4x16x8xf32, #tpu.memory_space<vmem>>, vector<4x16x8xf32>,
    } else {
    }
    %c0_3 = arith.constant 0 : index
    %c0_4 = arith.constant 0 : index
    %c0_5 = arith.constant 0 : index
    %11 = vector.load %arg2[%c0_3, %c0_4, %c0_5] : memref<1x8x32xf32, #tpu.memory_space<vmem>>, vector<1x8x32xf32>
    %12 = vector.shape_cast %11 : vector<1x8x32xf32> to vector<8x32xf32>
    %cst = arith.constant dense<0.000000e+00> : vector<8xf32>
    %13 = vector.multi_reduction <add>, %12, %cst [1] : vector<8x32xf32> to vector<8xf32>
    %14 = vector.shape_cast %13 : vector<8xf32> to vector<8x1xf32>
    %cst_6 = arith.constant 3.200000e+01 : f32
    %15 = vector.broadcast %cst_6 : f32 to vector<8x1xf32>
    %16 = arith.divf %14, %15 : vector<8x1xf32>
    %17 = vector.broadcast %16 : vector<8x1xf32> to vector<8x32xf32>
    %18 = arith.subf %12, %17 : vector<8x32xf32>
    %19 = arith.mulf %18, %18 : vector<8x32xf32>
    %cst_7 = arith.constant dense<0.000000e+00> : vector<8xf32>
    %20 = vector.multi_reduction <add>, %19, %cst_7 [1] : vector<8x32xf32> to vector<8xf32>
    %21 = vector.shape_cast %20 : vector<8xf32> to vector<8x1xf32>
    %cst_8 = arith.constant 3.200000e+01 : f32
    %22 = vector.broadcast %cst_8 : f32 to vector<8x1xf32>
    %23 = arith.divf %21, %22 : vector<8x1xf32>
    %24 = vector.broadcast %16 : vector<8x1xf32> to vector<8x32xf32>
    %25 = arith.subf %12, %24 : vector<8x32xf32>
    %cst_9 = arith.constant 9.99999997E-7 : f32
    %26 = vector.broadcast %cst_9 : f32 to vector<8x1xf32>
    %27 = arith.addf %23, %26 : vector<8x1xf32>
    %28 = math.rsqrt %27 : vector<8x1xf32>
    %29 = vector.broadcast %28 : vector<8x1xf32> to vector<8x32xf32>
    %30 = arith.mulf %25, %29 : vector<8x32xf32>
    %cst_10 = arith.constant 1.000000e+00 : f32
    %31 = vector.broadcast %cst_10 : f32 to vector<1x32xf32>
    %32 = arith.addf %31, %3 : vector<1x32xf32>
    %33 = vector.broadcast %32 : vector<1x32xf32> to vector<8x32xf32>
    %34 = arith.mulf %30, %33 : vector<8x32xf32>
    %35 = vector.broadcast %2 : vector<1x32xf32> to vector<8x32xf32>
    %36 = arith.addf %34, %35 : vector<8x32xf32>
    %c0_11 = arith.constant 0 : index
    %c0_12 = arith.constant 0 : index
    %37 = vector.load %arg5[%c0_11, %c0_12] : memref<32x32xf32, #tpu.memory_space<vmem>>, vector<32x32xf32>
    %cst_13 = arith.constant dense<0.000000e+00> : vector<8x32xf32>
    %38 = tpu.matmul %36, %37, %cst_13 {dimension_numbers = #tpu.dot_dimension_numbers<[1], [0], [0], [1], [0, 0, 1, 1], [], []>} : vector<8x32xf32>, vector<32x32xf32>, vector<8x32xf32> -> vector<8x32xf32>
    %c0_14 = arith.constant 0 : index
    %c0_15 = arith.constant 0 : index
    %39 = vector.load %arg6[%c0_14, %c0_15] : memref<1x32xf32, #tpu.memory_space<vmem>>, vector<1x32xf32>
    %40 = vector.broadcast %39 : vector<1x32xf32> to vector<8x32xf32>
    %41 = arith.addf %38, %40 : vector<8x32xf32>
    %cst_16 = arith.constant 0.353553385 : f32
    %42 = vector.broadcast %cst_16 : f32 to vector<8x32xf32>
    %43 = arith.mulf %41, %42 : vector<8x32xf32>
    %44 = vector.extract_strided_slice %43 {offsets = [0, 0], sizes = [8, 8], strides = [1, 1]} : vector<8x32xf32> to vector<8x8xf32>
    %45 = vector.extract_strided_slice %43 {offsets = [0, 8], sizes = [8, 8], strides = [1, 1]} : vector<8x32xf32> to vector<8x8xf32>
    %46 = vector.extract_strided_slice %43 {offsets = [0, 16], sizes = [8, 8], strides = [1, 1]} : vector<8x32xf32> to vector<8x8xf32>
    %47 = vector.extract_strided_slice %43 {offsets = [0, 24], sizes = [8, 8], strides = [1, 1]} : vector<8x32xf32> to vector<8x8xf32>
    %48 = vector.shape_cast %44 : vector<8x8xf32> to vector<1x8x8xf32>
    %49 = vector.shape_cast %45 : vector<8x8xf32> to vector<1x8x8xf32>
    %50 = vector.shape_cast %46 : vector<8x8xf32> to vector<1x8x8xf32>
    %51 = vector.shape_cast %47 : vector<8x8xf32> to vector<1x8x8xf32>
    %52 = tpu.concatenate %48, %49, %50, %51 in 0 : vector<1x8x8xf32>, vector<1x8x8xf32>, vector<1x8x8xf32>, vector<1x8x8xf32> -> vector<4x8x8xf32>
    %c0_17 = arith.constant 0 : index
    %c0_18 = arith.constant 0 : index
    %c0_19 = arith.constant 0 : index
    %53 = vector.load %arg18[%c0_17, %c0_18, %c0_19] : memref<4x16x8xf32, #tpu.memory_space<vmem>>, vector<4x16x8xf32>
    %cst_20 = arith.constant dense<0.000000e+00> : vector<4x8x16xf32>
    %54 = tpu.matmul %52, %53, %cst_20 {dimension_numbers = #tpu.dot_dimension_numbers<[2], [2], [1], [1], [0, 0, 0, 1, 1, 1], [0], [0]>} : vector<4x8x8xf32>, vector<4x16x8xf32>, vector<4x8x16xf32> -> vector<4x8x16xf32>
    %cst_21 = arith.constant dense<0xFF800000> : vector<4x8xf32>
    %55 = vector.multi_reduction <maximumf>, %54, %cst_21 [2] : vector<4x8x16xf32> to vector<4x8xf32>
    %56 = vector.shape_cast %55 : vector<4x8xf32> to vector<4x8x1xf32>
    %57 = vector.broadcast %56 : vector<4x8x1xf32> to vector<4x8x16xf32>
    %58 = arith.subf %54, %57 : vector<4x8x16xf32>
    %59 = math.exp %58 : vector<4x8x16xf32>
    %cst_22 = arith.constant dense<0.000000e+00> : vector<4x8xf32>
    %60 = vector.multi_reduction <add>, %59, %cst_22 [2] : vector<4x8x16xf32> to vector<4x8xf32>
    %61 = vector.shape_cast %60 : vector<4x8xf32> to vector<4x8x1xf32>
    %62 = vector.broadcast %61 : vector<4x8x1xf32> to vector<4x8x16xf32>
    %63 = arith.divf %59, %62 : vector<4x8x16xf32>
    %c0_23 = arith.constant 0 : index
    %c0_24 = arith.constant 0 : index
    %c0_25 = arith.constant 0 : index
    %64 = vector.load %arg19[%c0_23, %c0_24, %c0_25] : memref<4x16x8xf32, #tpu.memory_space<vmem>>, vector<4x16x8xf32>
    %cst_26 = arith.constant dense<0.000000e+00> : vector<4x8x8xf32>
    %65 = tpu.matmul %63, %64, %cst_26 {dimension_numbers = #tpu.dot_dimension_numbers<[2], [1], [1], [2], [0, 0, 0, 1, 1, 2], [0], [0]>} : vector<4x8x16xf32>, vector<4x16x8xf32>, vector<4x8x8xf32> -> vector<4x8x8xf32>
    %c0_27 = arith.constant 0 : index
    %c0_28 = arith.constant 0 : index
    %c0_29 = arith.constant 0 : index
    %66 = vector.load %arg11[%c0_27, %c0_28, %c0_29] : memref<4x8x32xf32, #tpu.memory_space<vmem>>, vector<4x8x32xf32>
    %cst_30 = arith.constant dense<0.000000e+00> : vector<4x8x32xf32>
    %67 = tpu.matmul %65, %66, %cst_30 {dimension_numbers = #tpu.dot_dimension_numbers<[2], [1], [1], [2], [0, 0, 0, 1, 1, 2], [0], [0]>} : vector<4x8x8xf32>, vector<4x8x32xf32>, vector<4x8x32xf32> -> vector<4x8x32xf32>
    %cst_31 = arith.constant dense<0.000000e+00> : vector<8x32xf32>
    %68 = vector.multi_reduction <add>, %67, %cst_31 [0] : vector<4x8x32xf32> to vector<8x32xf32>
    %c0_32 = arith.constant 0 : index
    %c0_33 = arith.constant 0 : index
    %69 = vector.load %arg12[%c0_32, %c0_33] : memref<1x32xf32, #tpu.memory_space<vmem>>, vector<1x32xf32>
    %70 = vector.broadcast %69 : vector<1x32xf32> to vector<8x32xf32>
    %71 = arith.addf %68, %70 : vector<8x32xf32>
    %72 = vector.broadcast %4 : vector<1x32xf32> to vector<8x32xf32>
    %73 = arith.mulf %72, %71 : vector<8x32xf32>
    %74 = arith.addf %12, %73 : vector<8x32xf32>
    %cst_34 = arith.constant dense<0.000000e+00> : vector<8xf32>
    %75 = vector.multi_reduction <add>, %74, %cst_34 [1] : vector<8x32xf32> to vector<8xf32>
    %76 = vector.shape_cast %75 : vector<8xf32> to vector<8x1xf32>
    %cst_35 = arith.constant 3.200000e+01 : f32
    %77 = vector.broadcast %cst_35 : f32 to vector<8x1xf32>
    %78 = arith.divf %76, %77 : vector<8x1xf32>
    %79 = vector.broadcast %78 : vector<8x1xf32> to vector<8x32xf32>
    %80 = arith.subf %74, %79 : vector<8x32xf32>
    %81 = arith.mulf %80, %80 : vector<8x32xf32>
    %cst_36 = arith.constant dense<0.000000e+00> : vector<8xf32>
    %82 = vector.multi_reduction <add>, %81, %cst_36 [1] : vector<8x32xf32> to vector<8xf32>
    %83 = vector.shape_cast %82 : vector<8xf32> to vector<8x1xf32>
    %cst_37 = arith.constant 3.200000e+01 : f32
    %84 = vector.broadcast %cst_37 : f32 to vector<8x1xf32>
    %85 = arith.divf %83, %84 : vector<8x1xf32>
    %86 = vector.broadcast %78 : vector<8x1xf32> to vector<8x32xf32>
    %87 = arith.subf %74, %86 : vector<8x32xf32>
    %cst_38 = arith.constant 9.99999997E-7 : f32
    %88 = vector.broadcast %cst_38 : f32 to vector<8x1xf32>
    %89 = arith.addf %85, %88 : vector<8x1xf32>
    %90 = math.rsqrt %89 : vector<8x1xf32>
    %91 = vector.broadcast %90 : vector<8x1xf32> to vector<8x32xf32>
    %92 = arith.mulf %87, %91 : vector<8x32xf32>
    %cst_39 = arith.constant 1.000000e+00 : f32
    %93 = vector.broadcast %cst_39 : f32 to vector<1x32xf32>
    %94 = arith.addf %93, %6 : vector<1x32xf32>
    %95 = vector.broadcast %94 : vector<1x32xf32> to vector<8x32xf32>
    %96 = arith.mulf %92, %95 : vector<8x32xf32>
    %97 = vector.broadcast %5 : vector<1x32xf32> to vector<8x32xf32>
    %98 = arith.addf %96, %97 : vector<8x32xf32>
    %c0_40 = arith.constant 0 : index
    %c0_41 = arith.constant 0 : index
    %99 = vector.load %arg13[%c0_40, %c0_41] : memref<32x128xf32, #tpu.memory_space<vmem>>, vector<32x128xf32>
    %cst_42 = arith.constant dense<0.000000e+00> : vector<8x128xf32>
    %100 = tpu.matmul %98, %99, %cst_42 {dimension_numbers = #tpu.dot_dimension_numbers<[1], [0], [0], [1], [0, 0, 1, 1], [], []>} : vector<8x32xf32>, vector<32x128xf32>, vector<8x128xf32> -> vector<8x128xf32>
    %c0_43 = arith.constant 0 : index
    %c0_44 = arith.constant 0 : index
    %101 = vector.load %arg14[%c0_43, %c0_44] : memref<1x128xf32, #tpu.memory_space<vmem>>, vector<1x128xf32>
    %102 = vector.broadcast %101 : vector<1x128xf32> to vector<8x128xf32>
    %103 = arith.addf %100, %102 : vector<8x128xf32>
    %cst_45 = arith.constant 5.000000e-01 : f32
    %104 = vector.broadcast %cst_45 : f32 to vector<8x128xf32>
    %105 = arith.mulf %104, %103 : vector<8x128xf32>
    %cst_46 = arith.constant 4.471500e-02 : f32
    %106 = vector.broadcast %cst_46 : f32 to vector<8x128xf32>
    %107 = arith.mulf %106, %103 : vector<8x128xf32>
    %108 = arith.mulf %107, %103 : vector<8x128xf32>
    %109 = arith.mulf %108, %103 : vector<8x128xf32>
    %110 = arith.addf %103, %109 : vector<8x128xf32>
    %cst_47 = arith.constant 0.797884583 : f32
    %111 = vector.broadcast %cst_47 : f32 to vector<8x128xf32>
    %112 = arith.mulf %111, %110 : vector<8x128xf32>
    %113 = math.tanh %112 : vector<8x128xf32>
    %cst_48 = arith.constant 1.000000e+00 : f32
    %114 = vector.broadcast %cst_48 : f32 to vector<8x128xf32>
    %115 = arith.addf %114, %113 : vector<8x128xf32>
    %116 = arith.mulf %105, %115 : vector<8x128xf32>
    %c0_49 = arith.constant 0 : index
    %c0_50 = arith.constant 0 : index
    %117 = vector.load %arg15[%c0_49, %c0_50] : memref<128x32xf32, #tpu.memory_space<vmem>>, vector<128x32xf32>
    %cst_51 = arith.constant dense<0.000000e+00> : vector<8x32xf32>
    %118 = tpu.matmul %116, %117, %cst_51 {dimension_numbers = #tpu.dot_dimension_numbers<[1], [0], [0], [1], [0, 0, 1, 1], [], []>} : vector<8x128xf32>, vector<128x32xf32>, vector<8x32xf32> -> vector<8x32xf32>
    %c0_52 = arith.constant 0 : index
    %c0_53 = arith.constant 0 : index
    %119 = vector.load %arg16[%c0_52, %c0_53] : memref<1x32xf32, #tpu.memory_space<vmem>>, vector<1x32xf32>
    %120 = vector.broadcast %119 : vector<1x32xf32> to vector<8x32xf32>
    %121 = arith.addf %118, %120 : vector<8x32xf32>
    %122 = vector.broadcast %7 : vector<1x32xf32> to vector<8x32xf32>
    %123 = arith.mulf %122, %121 : vector<8x32xf32>
    %124 = arith.addf %74, %123 : vector<8x32xf32>
    %c0_54 = arith.constant 0 : index
    %c0_55 = arith.constant 0 : index
    %c0_56 = arith.constant 0 : index
    %125 = vector.load %arg17[%c0_54, %c0_55, %c0_56] : memref<1x8x32xf32, #tpu.memory_space<vmem>>, vector<1x8x32xf32>
    %126 = vector.shape_cast %125 : vector<1x8x32xf32> to vector<8x32xf32>
    %127 = vector.shape_cast %124 : vector<8x32xf32> to vector<1x8x32xf32>
    tpu.vector_store %arg17[%c0_54, %c0_55, %c0_56], %127 {strides = array<i32>} : memref<1x8x32xf32, #tpu.memory_space<vmem>>, vector<1x8x32xf32>,
    return
  }
  func.func @transform_0(%arg0: i32, %arg1: i32) -> (i32, i32, i32) {
    %c0_i32 = arith.constant 0 : i32
    %c0_i32_0 = arith.constant 0 : i32
    return %arg0, %arg1, %c0_i32 : i32, i32, i32
  }
  func.func @transform_1(%arg0: i32, %arg1: i32) -> (i32, i32, i32) {
    %c0_i32 = arith.constant 0 : i32
    %c0_i32_0 = arith.constant 0 : i32
    %c0_i32_1 = arith.constant 0 : i32
    return %arg0, %c0_i32, %c0_i32_0 : i32, i32, i32
  }
  func.func @transform_2(%arg0: i32, %arg1: i32) -> (i32, i32, i32) {
    %c0_i32 = arith.constant 0 : i32
    %c0_i32_0 = arith.constant 0 : i32
    %c0_i32_1 = arith.constant 0 : i32
    return %arg0, %c0_i32, %c0_i32_0 : i32, i32, i32
  }
  func.func @transform_3(%arg0: i32, %arg1: i32) -> (i32, i32) {
    %c0_i32 = arith.constant 0 : i32
    %c0_i32_0 = arith.constant 0 : i32
    %c0_i32_1 = arith.constant 0 : i32
    return %c0_i32, %c0_i32_0 : i32, i32
  }
  func.func @transform_4(%arg0: i32, %arg1: i32) -> (i32, i32) {
    %c0_i32 = arith.constant 0 : i32
    %c0_i32_0 = arith.constant 0 : i32
    %c0_i32_1 = arith.constant 0 : i32
    return %c0_i32, %c0_i32_0 : i32, i32
  }
  func.func @transform_5(%arg0: i32, %arg1: i32) -> (i32, i32) {
    %c0_i32 = arith.constant 0 : i32
    %c0_i32_0 = arith.constant 0 : i32
    %c0_i32_1 = arith.constant 0 : i32
    return %c0_i32, %c0_i32_0 : i32, i32
  }
  func.func @transform_6(%arg0: i32, %arg1: i32) -> (i32, i32) {
    %c0_i32 = arith.constant 0 : i32
    %c0_i32_0 = arith.constant 0 : i32
    %c0_i32_1 = arith.constant 0 : i32
    return %c0_i32, %c0_i32_0 : i32, i32
  }
  func.func @transform_7(%arg0: i32, %arg1: i32) -> (i32, i32) {
    %c0_i32 = arith.constant 0 : i32
    %c0_i32_0 = arith.constant 0 : i32
    %c0_i32_1 = arith.constant 0 : i32
    return %c0_i32, %c0_i32_0 : i32, i32
  }
  func.func @transform_8(%arg0: i32, %arg1: i32) -> (i32, i32) {
    %c0_i32 = arith.constant 0 : i32
    %c0_i32_0 = arith.constant 0 : i32
    %c0_i32_1 = arith.constant 0 : i32
    return %c0_i32, %c0_i32_0 : i32, i32
  }
  func.func @transform_9(%arg0: i32, %arg1: i32) -> (i32, i32, i32) {
    %c0_i32 = arith.constant 0 : i32
    %c0_i32_0 = arith.constant 0 : i32
    %c0_i32_1 = arith.constant 0 : i32
    %c0_i32_2 = arith.constant 0 : i32
    return %c0_i32, %c0_i32_0, %c0_i32_1 : i32, i32, i32
  }
  func.func @transform_10(%arg0: i32, %arg1: i32) -> (i32, i32) {
    %c0_i32 = arith.constant 0 : i32
    %c0_i32_0 = arith.constant 0 : i32
    %c0_i32_1 = arith.constant 0 : i32
    return %c0_i32, %c0_i32_0 : i32, i32
  }
  func.func @transform_11(%arg0: i32, %arg1: i32) -> (i32, i32) {
    %c0_i32 = arith.constant 0 : i32
    %c0_i32_0 = arith.constant 0 : i32
    %c0_i32_1 = arith.constant 0 : i32
    return %c0_i32, %c0_i32_0 : i32, i32
  }
  func.func @transform_12(%arg0: i32, %arg1: i32) -> (i32, i32) {
    %c0_i32 = arith.constant 0 : i32
    %c0_i32_0 = arith.constant 0 : i32
    %c0_i32_1 = arith.constant 0 : i32
    return %c0_i32, %c0_i32_0 : i32, i32
  }
  func.func @transform_13(%arg0: i32, %arg1: i32) -> (i32, i32) {
    %c0_i32 = arith.constant 0 : i32
    %c0_i32_0 = arith.constant 0 : i32
    %c0_i32_1 = arith.constant 0 : i32
    return %c0_i32, %c0_i32_0 : i32, i32
  }
  func.func @transform_14(%arg0: i32, %arg1: i32) -> (i32, i32) {
    %c0_i32 = arith.constant 0 : i32
    %c0_i32_0 = arith.constant 0 : i32
    %c0_i32_1 = arith.constant 0 : i32
    return %c0_i32, %c0_i32_0 : i32, i32
  }
  func.func @transform_15(%arg0: i32, %arg1: i32) -> (i32, i32, i32) {
    %c0_i32 = arith.constant 0 : i32
    %c0_i32_0 = arith.constant 0 : i32
    return %arg0, %arg1, %c0_i32 : i32, i32, i32
  }
}

</mosaic_0001>

<bundles_post_ra>
// kernel: tpu_custom_call.1
= control target key start
LH: loop header
LB: loop body
LE: loop exit
PB: predicated region body
PF: predicated region fallthrough
CT: control target
= control target key end

     0   :  { %s3730_s0 = inlined_call_operand.vmem [shape: f32[2,16,32], index: 0, kind: input, shape index: {}]   ;;  %s3731_s1 = inlined_call_operand.vmem [shape: f32[2,16,32], index: 1, kind: input, shape index: {}]   ;;  %s3732_s2 = inlined_call_operand.vmem [shape: f32[2,6,32], index: 2, kind: input, shape index: {}]   ;;  %s3733_s3 = inlined_call_operand.vmem [shape: f32[32,32], index: 3, kind: input, shape index: {}]   ;;  %s3734_s4 = inlined_call_operand.vmem [shape: f32[1,32], index: 4, kind: input, shape index: {}]   ;;  %s3735_s5 = inlined_call_operand.vmem [shape: f32[32,32], index: 5, kind: input, shape index: {}]   ;;  %s3736_s6 = inlined_call_operand.hbm [shape: f32[1,32], index: 6, kind: input, shape index: {}]   ;;  %s3737_s7 = inlined_call_operand.vmem [shape: f32[32,32], index: 7, kind: input, shape index: {}]   ;;  %s3738_s8 = inlined_call_operand.hbm [shape: f32[1,32], index: 8, kind: input, shape index: {}]   ;;  %s3739_s9 = inlined_call_operand.vmem [shape: f32[4,8,32], index: 9, kind: input, shape index: {}]   ;;  %s3740_s10 = inlined_call_operand.hbm [shape: f32[1,32], index: 10, kind: input, shape index: {}]   ;;  %s3741_s11 = inlined_call_operand.hbm [shape: f32[32,128], index: 11, kind: input, shape index: {}]   ;;  %s3742_s12 = inlined_call_operand.vmem [shape: f32[1,128], index: 12, kind: input, shape index: {}]   ;;  %s3743_s13 = inlined_call_operand.vmem [shape: f32[128,32], index: 13, kind: input, shape index: {}]   ;;  %s3744_s14 = inlined_call_operand.vmem [shape: f32[1,32], index: 14, kind: input, shape index: {}]   ;;  %s3745_s15 = inlined_call_operand.hbm [shape: f32[2,16,32], index: 15, kind: output, shape index: {}]  }
   0x1   :  { %3763 = sst [smem:[#allocation27_spill]] %s3736_s6 }
   0x2   :  { %3764 = sst [smem:[#allocation28_spill]] %s3738_s8 }
   0x3   :  { %3765 = sst [smem:[#allocation29_spill]] %s3742_s12 }
   0x4   :  { %3766 = sst [smem:[#allocation30_spill]] %s3743_s13 }
   0x5   :  { %3767 = sst [smem:[#allocation31_spill]] %s3744_s14 }
   0x6   :  { %3768 = sst [smem:[#allocation32_spill]] %s3745_s15 }
   0x7   :  { %20 = vsyncpa [#allocation5], 0 }
   0x8   :  { %21 = vsyncpa [#allocation8], 0 }
   0x9   :  { %22 = vsyncpa [#allocation11], 0 }
   0xa   :  { %23 = vsyncpa [#allocation6], 0 }
   0xb   :  { %25 = vsyncpa [#allocation6 + $0x1], 0  ;;  %s3197_s18 = smov 0   ;;  %s3199_s19 = smov 0  }
   0xc   :  { %s3201_s20 = smov 0   ;;  %s3203_s21 = smov 0  }
   0xd   :  { %s3205_s22 = smov 0   ;;  %s3207_s23 = smov 0  }
   0xe   :  { %s3209_s24 = smov 0   ;;  %s3211_s25 = smov 0  }
   0xf LB: > { %3769 = sst [smem:[#allocation17_spill]] %s3071_s18  ;;  %s2368_s26 = sadd.s32 4294967295, %s3099_s25   ;;  %s3099_s25 = sphi %s3211_s25, %s31_s25   ;;  %s3095_s24 = sphi %s3209_s24, %s3810_s24   ;;  %s3091_s23 = sphi %s3207_s23, %s3809_s23   ;;  %s3087_s22 = sphi %s3205_s22, %s3808_s22   ;;  %s3083_s21 = sphi %s3203_s21, %s3807_s21   ;;  %s3079_s20 = sphi %s3201_s20, %s3806_s20   ;;  %s3075_s19 = sphi %s3199_s19, %s3812_s19   ;;  %s3071_s18 = sphi %s3197_s18, %s3811_s18  }
  0x10   : > { %3770 = sst [smem:[#allocation18_spill]] %s3079_s20  ;;  %s2369_s27 = sadd.s32 4294967294, %s3099_s25  }
  0x11   : > { %3771 = sst [smem:[#allocation19_spill]] %s3091_s23  ;;  %s40_s28 = sadd.s32 1, %s3091_s23 }
  0x12   : > { %3772 = sst [smem:[#allocation20_spill]] %s3095_s24  ;;  %s43_s29 = sadd.s32 1, %s3095_s24 }
  0x13   : > { %3773 = sst [smem:[#allocation21_spill]] %s3099_s25  ;;  %p41_p0 = scmp.ge.s32.totalorder %s40_s28, 2 }
  0x14   : > { %s384_s30 = sadd.s32 1, %s3079_s20  ;;  %p394_p1 = scmp.ne.s32.totalorder %s3079_s20, %s3075_s19 }
  0x15   : > { %p395_p2 = scmp.eq.s32.totalorder %s2368_s26, 3  ;;  %s3814_s28 = smov (%p41_p0, %s40_s28), 0 }
  0x16   : > { %3774 = sst [smem:[#allocation22_spill]] %s3814_s28  ;;  %s3816_s29 = smov (!%p41_p0, %s43_s29), %s3095_s24 }
  0x17   : > { %s380_s16 = ssub.s32 %s3091_s23, %s3814_s28  ;;  %p3249_p3 = por %p395_p2, %p394_p1 }
  0x18   : > { %p45_p4 = scmp.ge.s32.totalorder %s3816_s29, 2  ;;  %p400_p5 = scmp.ne.s32.totalorder %s3075_s19, %s3071_s18 }
  0x19   : > { %s3775_s17 = scalar_select %p3249_p3, 1, 0 }
  0x1a   : > { %p401_p6 = scmp.eq.s32.totalorder %s2369_s27, 3  ;;  %p2370_p7 = scmp.ge.s32.totalorder %s3099_s25, 1 }
  0x1b   : > { %3776 = sst [smem:[#allocation23_spill]] %s3775_s17  ;;  %s3818_s29 = smov (%p45_p4, %s3816_s29), 0 }
  0x1c   : > { %3777 = sst [smem:[#allocation24_spill]] %s3818_s29  ;;  %p3258_p8 = por %p401_p6, %p400_p5 }
  0x1d   : > { %p408_p9 = scmp.lt.s32.totalorder %s3099_s25, 5  ;;  %s379_s14 = ssub.s32 %s3095_s24, %s3818_s29 }
  0x1e   : > { %s3778_s15 = scalar_select %p3258_p8, 1, 0 }
  0x1f   : > { %s381_s12 = sor.u32 %s380_s16, %s379_s14  ;;  %p3265_p10 = pnand %p2370_p7, %p408_p9 }
  0x20   : > { %3779 = sst [smem:[#allocation25_spill]] %s3778_s15  ;;  %p382_p11 = scmp.eq.s32.totalorder %s381_s12, 0 }
  0x21   : > { %s3780_s28 = scalar_select %p3265_p10, 1, 0 }
  0x22   : > { %p3269_p12 = scmp.eq.s32.totalorder %s2368_s26, 0  ;;  %p2750_p13 = pneg %p3265_p10 }
  0x23   : > { %s3276_s27 = scalar_select %p382_p11, %s3079_s20, %s384_s30  }
  0x24   : > { %s3781_s23 = scalar_select %p3269_p12, 1, 0 }
  0x25   : > { %3782 = sst [smem:[#allocation26_spill]] %s3276_s27  ;;  %p3280_p0 = pnand %p3269_p12, %p2750_p13 }
  0x26   : > { %s3101_s14 = smov [#allocation7]   ;;  %s3784_s8 = sld [smem:[#allocation28_spill]] }
  0x27   : > { %s444_s16 = sshll.u32 %s3101_s14, 4  ;;  %p3292_p2 = pneg %p3280_p0  ;;  %s445_s16 = int_to_ptr.vmem [resolvable:$true] %s444_s16 }
  0x2c   : > { %s2881_s26 = scalar_lea.hbm %s3784_s8, 16 }
  0x2d   : > { %p2882_p1 = scmp.ne.s32.totalorder %s3784_s8, %s2881_s26  ;;  %p2888_p6 = scmp.lt.u32.totalorder %s2881_s26, %s3784_s8 }
  0x2f   : > { %p2884_p4 = pnand %p3292_p2, %p2882_p1 }
  0x31   : > { %p2885_p5 = pneg %p2884_p4 }
  0x33   : > { %p2890_p7 = pnand %p2888_p6, %p2885_p5 }
  0x35   : > { %2893 = shalt.err (!%p2890_p7)
}
  0x36   : > { %s2894_s29 = scalar_lea.vmem %s445_s16, 16  ;;  %s2901_s18 = scalar_lea.vmem %s445_s16, 32 }
  0x37   : > { %p2895_p9 = scmp.ne.s32.totalorder %s445_s16, %s2894_s29  ;;  %p2902_p8 = scmp.lt.s32.totalorder %s445_s16, %s445_s16 }
  0x38   : > { %p2903_p3 = scmp.lt.s32.totalorder %s2901_s18, %s2894_s29 }
  0x39   : > { %p2897_p11 = pnand %p2895_p9, %p3292_p2 }
  0x3a   : > { %p2904_p12 = por %p2903_p3, %p2902_p8 }
  0x3b   : > { %p2898_p13 = pneg %p2897_p11 }
  0x3d   : > { %p2905_p10 = pnand %p2904_p12, %p2898_p13 }
  0x3f   : > { %2908 = shalt.err (!%p2905_p10)
}
  0x40   : > { %2756 = dma.hbm_to_vmem [thread:$0]  (!%p3280_p0), %s3784_s8, 16, %s445_s16, [#allocation8]  }
  0x41   : > { %s3102_s27 = smov [#allocation4]   ;;  %s3103_s14 = smov [#allocation9]  }
  0x42   : > { %s430_s26 = sshll.u32 %s3102_s27, 4  ;;  %s458_s20 = sshll.u32 %s3103_s14, 4  ;;  %s431_s26 = int_to_ptr.vmem [resolvable:$true] %s430_s26  ;;  %s3308_s20 = int_to_ptr.vmem [resolvable:$true] %s458_s20 }
  0x43   : > { %s3786_s6 = sld [smem:[#allocation27_spill]] }
  0x49   : > { %s2909_s29 = scalar_lea.hbm %s3786_s6, 16 }
  0x4a   : > { %p2910_p3 = scmp.ne.s32.totalorder %s3786_s6, %s2909_s29  ;;  %p2916_p12 = scmp.lt.u32.totalorder %s2909_s29, %s3786_s6 }
  0x4c   : > { %p2912_p8 = pnand %p2910_p3, %p3292_p2 }
  0x4e   : > { %p2913_p10 = pneg %p2912_p8 }
  0x50   : > { %p2918_p1 = pnand %p2916_p12, %p2913_p10 }
  0x52   : > { %2921 = shalt.err (!%p2918_p1)
}
  0x53   : > { %s2922_s12 = scalar_lea.vmem %s431_s26, 16  ;;  %s2929_s25 = scalar_lea.vmem %s431_s26, 32 }
  0x54   : > { %p2923_p4 = scmp.ne.s32.totalorder %s431_s26, %s2922_s12  ;;  %p2930_p7 = scmp.lt.s32.totalorder %s431_s26, %s431_s26 }
  0x55   : > { %p2931_p9 = scmp.lt.s32.totalorder %s2929_s25, %s2922_s12 }
  0x56   : > { %p2925_p5 = pnand %p2923_p4, %p3292_p2 }
  0x57   : > { %p2932_p11 = por %p2931_p9, %p2930_p7 }
  0x58   : > { %p2926_p6 = pneg %p2925_p5 }
  0x5a   : > { %p2933_p13 = pnand %p2932_p11, %p2926_p6 }
  0x5c   : > { %2936 = shalt.err (!%p2933_p13)
}
  0x5d   : > { %2753 = dma.hbm_to_vmem [thread:$0]  (!%p3280_p0), %s3786_s6, 16, %s431_s26, [#allocation5]  }
  0x5e   : > { %s2937_s29 = scalar_lea.hbm %s3740_s10, 16 }
  0x5f   : > { %p2938_p3 = scmp.ne.s32.totalorder %s3740_s10, %s2937_s29  ;;  %p2944_p12 = scmp.lt.u32.totalorder %s2937_s29, %s3740_s10 }
  0x61   : > { %p2940_p8 = pnand %p2938_p3, %p3292_p2 }
  0x63   : > { %p2941_p10 = pneg %p2940_p8 }
  0x65   : > { %p2946_p1 = pnand %p2944_p12, %p2941_p10 }
  0x67   : > { %2949 = shalt.err (!%p2946_p1)
}
  0x68   : > { %s2950_s26 = scalar_lea.vmem %s3308_s20, 16  ;;  %s2957_s25 = scalar_lea.vmem %s3308_s20, 32 }
  0x69   : > { %p2951_p4 = scmp.ne.s32.totalorder %s3308_s20, %s2950_s26  ;;  %p2958_p7 = scmp.lt.s32.totalorder %s3308_s20, %s3308_s20 }
  0x6a   : > { %p2959_p9 = scmp.lt.s32.totalorder %s2957_s25, %s2950_s26 }
  0x6b   : > { %p2953_p5 = pnand %p2951_p4, %p3292_p2 }
  0x6c   : > { %p2960_p11 = por %p2959_p9, %p2958_p7 }
  0x6d   : > { %p2954_p6 = pneg %p2953_p5 }
  0x6f   : > { %p2961_p13 = pnand %p2960_p11, %p2954_p6 }
  0x71   : > { %2964 = shalt.err (!%p2961_p13)
}
  0x72   : > { %2759 = dma.hbm_to_vmem [thread:$0]  (!%p3280_p0), %s3740_s10, 16, %s3308_s20, [#allocation8]  }
  0x73   : > { %s3104_s27 = smov [#allocation10]   ;;  %s2965_s24 = scalar_lea.hbm %s3741_s11, 512 }
  0x74   : > { %s468_s14 = sshll.u32 %s3104_s27, 4  ;;  %p2966_p3 = scmp.ne.s32.totalorder %s3741_s11, %s2965_s24  ;;  %s469_s14 = int_to_ptr.vmem [resolvable:$true] %s468_s14 }
  0x75   : > { %p2972_p12 = scmp.lt.u32.totalorder %s2965_s24, %s3741_s11 }
  0x76   : > { %p2968_p8 = pnand %p2966_p3, %p3292_p2 }
  0x78   : > { %p2969_p10 = pneg %p2968_p8 }
  0x7a   : > { %p2974_p1 = pnand %p2972_p12, %p2969_p10 }
  0x7c   : > { %2977 = shalt.err (!%p2974_p1)
}
  0x7d   : > { %s2978_s20 = scalar_lea.vmem %s469_s14, 512  ;;  %p2986_p7 = scmp.lt.s32.totalorder %s469_s14, %s469_s14 }
  0x7e   : > { %p2979_p4 = scmp.ne.s32.totalorder %s469_s14, %s2978_s20  ;;  %p2987_p9 = scmp.lt.s32.totalorder %s2978_s20, %s2978_s20 }
  0x80   : > { %p2981_p5 = pnand %p2979_p4, %p3292_p2  ;;  %p2988_p11 = por %p2987_p9, %p2986_p7 }
  0x82   : > { %p2982_p6 = pneg %p2981_p5 }
  0x84   : > { %p2989_p13 = pnand %p2988_p11, %p2982_p6 }
  0x86   : > { %2992 = shalt.err (!%p2989_p13)
}
  0x87   : > { %s3105_s13 = smov 128   ;;  %s3106_s17 = smov 8  }
  0x88   : > { %2762 = dma.hbm_to_vmem [thread:$0]  (!%p3280_p0), %s3741_s11, 512, %s469_s14, [#allocation11], %s3105_s13, %s3105_s13, %s3106_s17  }
  0x89   : > { %p3787_p3 = scmp.ne.s32.totalorder %s3780_s28, 0 }
  0x8a   : > { %p3788_p8 = scmp.ne.s32.totalorder (!%p3787_p3), %s3781_s23, 0 }
  0x8b   : > { %519 = sbr.rel (%p3787_p3) target bundleno = 3225 (0xc99), region = 80 }
  0x92   : > { %3054 = dma.done.wait (%p3788_p8), [#allocation5], 16  }
  0x93   : > { %3056 = vsyncadd (%p3788_p8), [#allocation5], 4294967280 }
  0x94   : > { %3058 = dma.done.wait (%p3788_p8), [#allocation8], 32  }
  0x95   : > { %3060 = vsyncadd (%p3788_p8), [#allocation8], 4294967264 }
  0x96   : > { %3062 = dma.done.wait (%p3788_p8), [#allocation11], 512  }
  0x97   : > { %3064 = vsyncadd (%p3788_p8), [#allocation11], 4294966784  ;;  %p591_p0 = scmp.lt.s32.totalorder %s3087_s22, 1  ;;  %p593_p2 = scmp.lt.s32.totalorder %s3083_s21, 1 }
  0x98   : > { %s3789_s6 = sand.u32 1, %s3075_s19   ;;  %p2387_p10 = scmp.ne.s32.totalorder %s3083_s21, 0 }
  0x99   : > { %s592_s28 = scalar_select %p591_p0, %s3087_s22, 1 }
  0x9a   : > { %s594_s30 = scalar_select %p593_p2, %s3083_s21, 1 }
  0x9b   : > { %s2382_s14 = sshll.u32 %s592_s28, 1  ;;  %s2425_s18 = sshll.u32 %s592_s28, 4  ;;  %vm615_vm0 = vcmask (!%p2387_p10), 261120   ;;  %v656_v15 = vld [vmem:[%s3735_s5] sm:$0xff] (!%p2387_p10)  ;;  %v657_v16 = vld [vmem:[%s3735_s5 + $0x8] sm:$0xff] (!%p2387_p10)  ;;  %v658_v20 = vld [vmem:[%s3735_s5 + $0x10] sm:$0xff] (!%p2387_p10)  ;;  %v644_v29 = vlaneseq (!%p2387_p10) }
  0x9c   : > { %s596_s24 = sadd.s32 %s2382_s14, %s594_s30  ;;  %s603_s26 = scalar_lea.vmem %s3731_s1, %s2425_s18  ;;  %v748_v17 = vld [vmem:[%s3737_s7] sm:$0xff] (!%p2387_p10)  ;;  %v2652_v18 = vpack.c.bf16 (!%p2387_p10), %v657_v16, %v656_v15  ;;  %v749_v19 = vld [vmem:[%s3737_s7 + $0x8] sm:$0xff] (!%p2387_p10)  ;;  %v659_v21 = vld [vmem:[%s3735_s5 + $0x18] sm:$0xff] (!%p2387_p10)  ;;  %vm854_vm1 = vcmask (!%p2387_p10), 64512  }
  0x9d   : > { %s2383_s23 = sshll.u32 %s596_s24, 3  ;;  %s2386_s25 = sshll.u32 %s592_s28, 3  ;;  %v613_v1 = vld [vmem:[%s603_s26] sm:$0xff] (!%p2387_p10)  ;;  %v614_v2 = vld [vmem:[%s603_s26 + $0x8] sm:$0xff] (!%p2387_p10)  ;;  %v2660_v22 = vpack.c.bf16 (!%p2387_p10), %v749_v19, %v748_v17  ;;  %v2656_v23 = vpack.c.bf16 (!%p2387_p10), %v659_v21, %v658_v20  ;;  %v750_v24 = vld [vmem:[%s3737_s7 + $0x10] sm:$0xff] (!%p2387_p10)  ;;  %v645_v33 = vshrl.u32 (!%p2387_p10), %v644_v29, 7 }
  0x9e   : > { %s3395_s17 = scalar_lea.vmem %s3730_s0, %s2383_s23  ;;  %s607_s15 = scalar_lea.vmem %s3732_s2, %s2386_s25  ;;  %v616_v3 = vsel (!%p2387_p10), %vm615_vm0, %v613_v1, 0.0  ;;  %v619_v4 = vsel (!%p2387_p10), %vm615_vm0, %v614_v2, 0.0  ;;  %2653 = vmatprep.subr.bf16.mxu0 (!%p2387_p10), %v2652_v18  ;;  %v751_v25 = vld [vmem:[%s3737_s7 + $0x18] sm:$0xff] (!%p2387_p10)  ;;  %v2388_v48 = vld [vmem:[#allocation4] ss:$0 sm:$0xff] (!%p2387_p10) }
  0x9f   : > { %v3400_v0 = vld [vmem:[%s607_s15] sm:$0x3f]  ;;  %s3404_s8 = sshll.u32 %s3789_s6, 3  ;;  %612 = sbr.rel (%p2387_p10) target bundleno = 829 (0x33d), region = 100  ;;  %617 = vadd.xlane.f32.xlu0 (!%p2387_p10), %v616_v3  ;;  %2661 = vmatprep.subr.bf16.mxu1 (!%p2387_p10), %v2660_v22  ;;  %v2664_v26 = vpack.c.bf16 (!%p2387_p10), %v751_v25, %v750_v24  ;;  %v646_v36 = vsub.s32 (!%p2387_p10), 1, %v645_v33  ;;  %v652_v37 = vsub.s32 (!%p2387_p10), 0, %v645_v33 }
  0xa0   : > { %s590_s30 = scalar_lea.vmem [#allocation12], %s3404_s8  ;;  %2655 = vmatpush3.bf16.msra.mxu0 (!%p2387_p10), %v2652_v18  ;;  %2663 = vmatpush3.bf16.msra.mxu1 (!%p2387_p10), %v2660_v22  ;;  %v643_v35 = vadd.f32 (!%p2387_p10), 1.0, %v3400_v0  ;;  %v2391_v49 = vld [vmem:[#allocation7] ss:$0 sm:$0xff] (!%p2387_p10)  ;;  %s3107_s15 = smov (!%p2387_p10), 120  }
  0xa1   : > { %2657 = vmatprep.subr.bf16.mxu0 (!%p2387_p10), %v2656_v23  ;;  %2665 = vmatprep.subr.bf16.mxu1 (!%p2387_p10), %v2664_v26  ;;  %v653_v41 = vrot.slane (!%p2387_p10), %v3400_v0, %v652_v37  ;;  %s3108_s28 = smov (!%p2387_p10), 112   ;;  %s3109_s14 = smov (!%p2387_p10), 104  }
  0xa2   : > { %v647_v38 = vrot.slane (!%p2387_p10), %v643_v35, %v646_v36 }
  0xa3   : > { %620 = vadd.xlane.f32.xlu0 (!%p2387_p10), %v619_v4 }
  0xa4   : > { %2659 = vmatpush3.bf16.msra.mxu0 (!%p2387_p10), %v2656_v23  ;;  %2667 = vmatpush3.bf16.msra.mxu1 (!%p2387_p10), %v2664_v26 }
 0x12c   : > { %v618_v5 = vpop.xlane.xlu0 %617 }
 0x12d   : > { %v623_v6 = vmul.f32 0.03125, %v618_v5 }
 0x12f   : > { %v625_v7 = vsub.f32 %v613_v1, %v623_v6 }
 0x130   : > { %v621_v8 = vpop.xlane.xlu0 %620 }
 0x131   : > { %v624_v9 = vmul.f32 0.03125, %v621_v8  ;;  %v627_v10 = vmul.f32 %v625_v7, %v625_v7 }
 0x133   : > { %v626_v11 = vsub.f32 %v614_v2, %v624_v9  ;;  %v629_v12 = vsel %vm615_vm0, %v627_v10, 0.0 }
 0x134   : > { %630 = vadd.xlane.f32.xlu1 %v629_v12 }
 0x135   : > { %v628_v13 = vmul.f32 %v626_v11, %v626_v11 }
 0x137   : > { %v632_v14 = vsel %vm615_vm0, %v628_v13, 0.0 }
 0x138   : > { %633 = vadd.xlane.f32.xlu1 %v632_v14 }
 0x1c1   : > { %v631_v27 = vpop.xlane.xlu1 %630 }
 0x1c2   : > { %v635_v28 = vmul.f32 0.03125, %v631_v27 }
 0x1c4   : > { %v637_v30 = vadd.f32 1e-06, %v635_v28 }
 0x1c5   : > { %v634_v31 = vpop.xlane.xlu1 %633 }
 0x1c6   : > { %2855 = vrsqrt.f32 %v637_v30  ;;  %v636_v32 = vmul.f32 0.03125, %v634_v31 }
 0x1c8   : > { %v638_v34 = vadd.f32 1e-06, %v636_v32 }
 0x1ca   : > { %2857 = vrsqrt.f32 %v638_v34 }
 0x1d0   : > { %v2856_v39 = vpop.eup %2855 }
 0x1d1   : > { %v641_v40 = vmul.f32 %v2856_v39, %v625_v7 }
 0x1d3   : > { %v648_v42 = vmul.f32 %v647_v38, %v641_v40 }
 0x1d4   : > { %v2858_v43 = vpop.eup %2857 }
 0x1d5   : > { %v642_v44 = vmul.f32 %v2858_v43, %v626_v11  ;;  %v654_v45 = vadd.f32 %v653_v41, %v648_v42 }
 0x1d7   : > { %v649_v46 = vmul.f32 %v647_v38, %v642_v44  ;;  %2505 = vmatprep.mubr.msk.f32.mxu0 %vm615_vm0, %v654_v45  ;;  %2516 = vmatprep.mubr.msk.f32.mxu1 %vm615_vm0, %v654_v45 }
 0x1d9   : > { %v655_v47 = vadd.f32 %v653_v41, %v649_v46 }
 0x1db   : > { %2506 = vmatmul.mubr.msk.f32.vlgmr.msra.gmra.mrb[0].mxu0 %vm615_vm0, %v655_v47  ;;  %2517 = vmatmul.mubr.msk.f32.vlgmr.msra.gmra.mrb[0].mxu1 %vm615_vm0, %v655_v47 }
 0x2ae   : > { %v2507_v50 = vpop.f32.mrb[0].mxu0  ;;  %v2518_v51 = vpop.f32.mrb[0].mxu1 }
 0x2af   : > { %v745_v52 = vadd.f32 %v2507_v50, %v2388_v48  ;;  %v831_v53 = vadd.f32 %v2518_v51, %v2391_v49  ;;  %v739_v54 = vpop.f32.mrb[1].mxu0  ;;  %v825_v55 = vpop.f32.mrb[1].mxu1 }
 0x2b0   : > { %v740_v56 = vadd.f32 %v2388_v48, %v739_v54  ;;  %v826_v57 = vadd.f32 %v2391_v49, %v825_v55 }
 0x2b1   : > { %856 = vst.msk [vmem:[#allocation2 + $0x8] sm:$0xff] %vm854_vm1, %v745_v52  ;;  %884 = vst.msk [vmem:[#allocation3 + $0x8] sm:$0xff] %vm854_vm1, %v831_v53  ;;  %838 = vrot.lane.b32.xlu1 %v745_v52, %s3107_s15 }
 0x2b2   : > { %855 = vst.msk [vmem:[#allocation2] sm:$0xff] %vm854_vm1, %v740_v56  ;;  %883 = vst.msk [vmem:[#allocation3] sm:$0xff] %vm854_vm1, %v826_v57  ;;  %836 = vrot.lane.b32.xlu0 %v740_v56, %s3107_s15 }
 0x2b5   : > { %844 = vrot.lane.b32.xlu1 %v745_v52, %s3108_s28 }
 0x2b6   : > { %848 = vrot.lane.b32.xlu0 %v740_v56, %s3109_s14 }
 0x2b9   : > { %850 = vrot.lane.b32.xlu1 %v745_v52, %s3109_s14 }
 0x2ba   : > { %865 = vrot.lane.b32.xlu0 %v826_v57, %s3107_s15 }
 0x2bd   : > { %867 = vrot.lane.b32.xlu1 %v831_v53, %s3107_s15 }
 0x2be   : > { %871 = vrot.lane.b32.xlu0 %v826_v57, %s3108_s28 }
 0x2c1   : > { %873 = vrot.lane.b32.xlu1 %v831_v53, %s3108_s28 }
 0x2c2   : > { %877 = vrot.lane.b32.xlu0 %v826_v57, %s3109_s14 }
 0x2c5   : > { %842 = vrot.lane.b32.xlu1 %v740_v56, %s3108_s28 }
 0x2c9   : > { %879 = vrot.lane.b32.xlu1 %v831_v53, %s3109_s14 }
 0x323   : > { %v839_v58 = vpop.permute.xlu1 %838 }
 0x324   : > { %858 = vst.msk [vmem:[#allocation2 + $0x18] sm:$0xff] %vm854_vm1, %v839_v58  ;;  %v837_v59 = vpop.permute.xlu0 %836 }
 0x325   : > { %857 = vst.msk [vmem:[#allocation2 + $0x10] sm:$0xff] %vm854_vm1, %v837_v59 }
 0x327   : > { %v845_v60 = vpop.permute.xlu1 %844 }
 0x328   : > { %860 = vst.msk [vmem:[#allocation2 + $0x28] sm:$0xff] %vm854_vm1, %v845_v60  ;;  %v849_v61 = vpop.permute.xlu0 %848 }
 0x329   : > { %861 = vst.msk [vmem:[#allocation2 + $0x30] sm:$0xff] %vm854_vm1, %v849_v61 }
 0x32b   : > { %v851_v62 = vpop.permute.xlu1 %850 }
 0x32c   : > { %862 = vst.msk [vmem:[#allocation2 + $0x38] sm:$0xff] %vm854_vm1, %v851_v62  ;;  %v866_v63 = vpop.permute.xlu0 %865 }
 0x32d   : > { %885 = vst.msk [vmem:[#allocation3 + $0x10] sm:$0xff] %vm854_vm1, %v866_v63 }
 0x32f   : > { %v868_v1 = vpop.permute.xlu1 %867 }
 0x330   : > { %886 = vst.msk [vmem:[#allocation3 + $0x18] sm:$0xff] %vm854_vm1, %v868_v1  ;;  %v872_v2 = vpop.permute.xlu0 %871 }
 0x331   : > { %887 = vst.msk [vmem:[#allocation3 + $0x20] sm:$0xff] %vm854_vm1, %v872_v2 }
 0x333   : > { %v874_v3 = vpop.permute.xlu1 %873 }
 0x334   : > { %888 = vst.msk [vmem:[#allocation3 + $0x28] sm:$0xff] %vm854_vm1, %v874_v3  ;;  %v878_v4 = vpop.permute.xlu0 %877 }
 0x335   : > { %889 = vst.msk [vmem:[#allocation3 + $0x30] sm:$0xff] %vm854_vm1, %v878_v4 }
 0x337   : > { %v843_v5 = vpop.permute.xlu1 %842 }
 0x338   : > { %859 = vst.msk [vmem:[#allocation2 + $0x20] sm:$0xff] %vm854_vm1, %v843_v5 }
 0x33b   : > { %v880_v6 = vpop.permute.xlu1 %879 }
 0x33c   : > { %890 = vst.msk [vmem:[#allocation3 + $0x38] sm:$0xff] %vm854_vm1, %v880_v6 }
 0x33d PF: > { %v3459_v7 = vld [vmem:[%s3395_s17] sm:$0xff]  ;;  %vm892_vm2 = vcmask 261120   ;;  %v919_v15 = vld [vmem:[%s3733_s3 + $0x8] sm:$0xff]  ;;  %v920_v16 = vld [vmem:[%s3733_s3 + $0x10] sm:$0xff]  ;;  %v3110_v17 = vmov 0.0|0.0   ;;  %vm3111_vm3 = vmmov 0   ;;  %v908_v24 = vlaneseq }
 0x33e   : > { %v893_v8 = vsel %vm892_vm2, %v3459_v7, 0.0  ;;  %v918_v14 = vld [vmem:[%s3733_s3] sm:$0xff]  ;;  %2668 = vmatprep.subr.bf16.mxu0 %v3110_v17  ;;  %v921_v19 = vld [vmem:[%s3733_s3 + $0x18] sm:$0xff]  ;;  %v3112_v20 = vmov 0.0   ;;  %2682 = vmatprep.subr.bf16.mxu1 %v3110_v17  ;;  %v3488_v27 = vadd.f32 1.0, %v3400_v0  ;;  %v1011_v35 = vld [vmem:[#allocation2 + $0x8] sm:$0xff] }
 0x33f   : > { %894 = vadd.xlane.f32.xlu0 %v893_v8  ;;  %v2669_v18 = vpack.c.bf16 %v919_v15, %v918_v14  ;;  %2527 = vmatprep.mubr.msk.f32.mxu0 %vm3111_vm3, %v3112_v20  ;;  %v2672_v21 = vpack.c.bf16 %v921_v19, %v920_v16  ;;  %v3485_v26 = vshrl.u32 %v908_v24, 7  ;;  %v1010_v34 = vld [vmem:[#allocation2] sm:$0xff]  ;;  %vm1018_vm4 = vcmask 64512   ;;  %v1015_v41 = vld [vmem:[#allocation2 + $0x28] sm:$0xff]  ;;  %v1012_v45 = vld [vmem:[#allocation2 + $0x10] sm:$0xff]  ;;  %s3113_s27 = smov 104  }
 0x340   : > { %2548 = vmatprep.mubr.msk.f32.mxu1 %vm3111_vm3, %v3112_v20  ;;  %v2675_v37 = vpack.c.bf16 %v1011_v35, %v1010_v34  ;;  %vm3496_vm5 = vmpackc.low %vm1018_vm4, %vm1018_vm4  ;;  %v1014_v40 = vld [vmem:[#allocation2 + $0x20] sm:$0xff]  ;;  %v1013_v46 = vld [vmem:[#allocation2 + $0x18] sm:$0xff]  ;;  %s3114_s29 = smov 120   ;;  %s3115_s6 = smov 112   ;;  %vm1331_vm6 = vcmask 130048  }
 0x341   : > { %2670 = vmatpush3.bf16.msra.mxu0 %v2669_v18  ;;  %v910_v28 = vsub.s32 1, %v3485_v26  ;;  %v915_v29 = vsub.s32 0, %v3485_v26  ;;  %v2683_v42 = vpack.c.bf16 %v1015_v41, %v1014_v40  ;;  %v2394_v43 = vld [vmem:[%s3734_s4] ss:$0 sm:$0xff]  ;;  %v2679_v50 = vpack.c.bf16 %v1013_v46, %v1012_v45  ;;  %v1016_v51 = vld [vmem:[#allocation2 + $0x30] sm:$0xff]  ;;  %v1017_v52 = vld [vmem:[#allocation2 + $0x38] sm:$0xff] }
 0x342   : > { %2671 = vmatprep.subr.bf16.mxu0 %v3110_v17  ;;  %v2687_v53 = vpack.c.bf16 %v1017_v52, %v1016_v51  ;;  %v1378_v34 = vld [vmem:[#allocation3 + $0x10] sm:$0xff]  ;;  %v1379_v35 = vld [vmem:[#allocation3 + $0x18] sm:$0xff]  ;;  %v1381_v39 = vld [vmem:[#allocation3 + $0x28] sm:$0xff]  ;;  %s3792_s25 = sld [smem:[#allocation30_spill]]  ;;  %s3795_s14 = sld [smem:[#allocation31_spill]] }
 0x343   : > { %v911_v30 = vrot.slane %v3488_v27, %v910_v28  ;;  %v916_v33 = vrot.slane %v3400_v0, %v915_v29  ;;  %2685 = vmatpush3.bf16.xpose.msk.msra.mxu1 %vm3496_vm5, %v2683_v42  ;;  %v1382_v46 = vld [vmem:[#allocation3 + $0x30] sm:$0xff]  ;;  %s3796_s18 = sld [smem:[#allocation23_spill]]  ;;  %s2225_s17 = sshll.u32 %s590_s30, 4  ;;  %s3674_s17 = int_to_ptr.vmem [resolvable:$true] %s2225_s17 }
 0x344   : > { %2693 = vmatprep.subr.bf16.mxu1 %v3110_v17  ;;  %s2993_s20 = scalar_lea.vmem %s3674_s17, 128 }
 0x345   : > { %2673 = vmatpush3.bf16.msra.mxu0 %v2672_v21  ;;  %p2994_p12 = scmp.ne.s32.totalorder %s3674_s17, %s2993_s20 }
 0x346   : > { %2674 = vmatprep.subr.bf16.mxu0 %v3110_v17 }
 0x348   : > { %s3793_s13 = smov %s3792_s25 }
 0x349   : > { %p3800_p1 = scmp.ne.s32.totalorder %s3796_s18, 0 }
 0x34b   : > { %p2995_p4 = pnand %p2994_p12, %p3800_p1 }
 0x34d   : > { %p2996_p5 = pneg %p2995_p4 }
 0x3cc   : > { %v895_v9 = vpop.xlane.xlu0 %894 }
 0x3cd   : > { %v897_v10 = vmul.f32 0.03125, %v895_v9 }
 0x3cf   : > { %v898_v11 = vsub.f32 %v3459_v7, %v897_v10 }
 0x3d1   : > { %v899_v12 = vmul.f32 %v898_v11, %v898_v11 }
 0x3d3   : > { %v900_v13 = vsel %vm892_vm2, %v899_v12, 0.0  ;;  %v1376_v12 = vld [vmem:[#allocation3] sm:$0xff] }
 0x3d4   : > { %901 = vadd.xlane.f32.xlu0 %v900_v13  ;;  %v1377_v13 = vld [vmem:[#allocation3 + $0x8] sm:$0xff] }
 0x3d5   : > { %v2691_v14 = vpack.c.bf16 %v1377_v13, %v1376_v12 }
 0x461   : > { %v902_v22 = vpop.xlane.xlu0 %901 }
 0x462   : > { %v903_v23 = vmul.f32 0.03125, %v902_v22 }
 0x464   : > { %v904_v25 = vadd.f32 1e-06, %v903_v23 }
 0x466   : > { %2859 = vrsqrt.f32 %v904_v25 }
 0x470   : > { %v2860_v31 = vpop.eup %2859 }
 0x471   : > { %v906_v32 = vmul.f32 %v2860_v31, %v898_v11 }
 0x473   : > { %v912_v36 = vmul.f32 %v911_v30, %v906_v32 }
 0x475   : > { %v917_v38 = vadd.f32 %v916_v33, %v912_v36  ;;  %v2694_v36 = vpack.c.bf16 %v1379_v35, %v1378_v34  ;;  %v2016_v35 = vld [vmem:[#allocation10] sm:$0xff] }
 0x477   : > { %2528 = vmatmul.mubr.msk.f32.vlgmr.msra.gmra.mrb[0].mxu0 %vm892_vm2, %v917_v38  ;;  %v1380_v38 = vld [vmem:[#allocation3 + $0x20] sm:$0xff] }
 0x478   : > { %2677 = vmatpush3.bf16.xpose.msk.msra.mxu0 %vm3496_vm5, %v2675_v37  ;;  %2534 = vmatprep.mubr.msk.f32.mxu0 %vm3111_vm3, %v3112_v20  ;;  %v2697_v41 = vpack.c.bf16 %v1381_v39, %v1380_v38  ;;  %v2019_v38 = vld [vmem:[#allocation10 + $0x18] sm:$0xff] }
 0x479   : > { %2678 = vmatprep.subr.bf16.mxu0 %v3110_v17 }
 0x54a   : > { %v998_v44 = vpop.f32.mrb[0].mxu0 }
 0x54b   : > { %v999_v47 = vadd.f32 %v2394_v43, %v998_v44  ;;  %v2529_v48 = vpop.f32.mrb[1].mxu0 }
 0x54d   : > { %v1002_v49 = vmul.f32 0.35355338, %v999_v47  ;;  %v1383_v47 = vld [vmem:[#allocation3 + $0x38] sm:$0xff] }
 0x54f   : > { %1008 = vrot.lane.b32.xlu0 %v1002_v49, %s3113_s27  ;;  %1004 = vrot.lane.b32.xlu1 %v1002_v49, %s3114_s29  ;;  %s3794_s29 = sld [smem:[#allocation29_spill]] }
 0x550   : > { %2535 = vmatmul.mubr.msk.f32.vlgmr.msra.gmra.mrb[2].mxu0 %vm1018_vm4, %v1002_v49 }
 0x551   : > { %2681 = vmatpush3.bf16.xpose.msk.msra.mxu0 %vm3496_vm5, %v2679_v50  ;;  %2541 = vmatprep.mubr.msk.f32.mxu0 %vm3111_vm3, %v3112_v20 }
 0x552   : > { %2686 = vmatprep.subr.bf16.mxu0 %v3110_v17 }
 0x553   : > { %1006 = vrot.lane.b32.xlu1 %v1002_v49, %s3115_s6  ;;  %v2700_v49 = vpack.c.bf16 %v1383_v47, %v1382_v46  ;;  %v2008_v46 = vsub.s32 4, %v3485_v26  ;;  %v2013_v47 = vsub.s32 3, %v3485_v26  ;;  %s2421_s6 = sshll.u32 %s3087_s22, 1  ;;  %s3797_s22 = sld [smem:[#allocation32_spill]] }
 0x554   : > { %s2221_s24 = sadd.s32 %s3083_s21, %s2421_s6  ;;  %s3799_s21 = sand.u32 1, %s3075_s19  }
 0x555   : > { %s2422_s16 = sshll.u32 %s2221_s24, 7 }
 0x559   : > { %s3798_s27 = smov %s3797_s22  ;;  %s3672_s23 = scalar_lea.hbm %s3797_s22, %s2422_s16 }
 0x5c1   : > { %v1005_v54 = vpop.permute.xlu1 %1004  ;;  %v1009_v56 = vpop.permute.xlu0 %1008 }
 0x5c2   : > { %2542 = vmatmul.mubr.msk.f32.vlgmr.msra.gmra.mrb[4].mxu0 %vm1018_vm4, %v1005_v54 }
 0x5c3   : > { %2689 = vmatpush3.bf16.xpose.msk.msra.mxu0 %vm3496_vm5, %v2687_v53  ;;  %2555 = vmatprep.mubr.msk.f32.mxu0 %vm3111_vm3, %v3112_v20  ;;  %v1676_v53 = vld [vmem:[%s3739_s9] sm:$0xff] }
 0x5c4   : > { %2690 = vmatprep.subr.bf16.mxu0 %v3110_v17 }
 0x5c5   : > { %v1007_v55 = vpop.permute.xlu1 %1006 }
 0x5c6   : > { %2549 = vmatmul.mubr.msk.f32.vlgmr.msra.gmra.mrb[0].mxu1 %vm1018_vm4, %v1007_v55 }
 0x5c7   : > { %2569 = vmatprep.mubr.msk.f32.mxu1 %vm3111_vm3, %v3112_v20  ;;  %2695 = vmatpush3.bf16.msra.mxu1 %v2694_v36  ;;  %v2017_v36 = vld [vmem:[#allocation10 + $0x8] sm:$0xff] }
 0x5c8   : > { %2699 = vmatprep.subr.bf16.mxu1 %v3110_v17 }
 0x5ca   : > { %2556 = vmatmul.mubr.msk.f32.vlgmr.msra.gmra.mrb[6].mxu0 %vm1018_vm4, %v1009_v56  ;;  %v1677_v56 = vld [vmem:[%s3739_s9 + $0x8] sm:$0xff] }
 0x5cb   : > { %2562 = vmatprep.mubr.msk.f32.mxu0 %vm3111_vm3, %v3112_v20  ;;  %2692 = vmatpush3.bf16.msra.mxu0 %v2691_v14 }
 0x5cc   : > { %2696 = vmatprep.subr.bf16.mxu0 %v3110_v17 }
 0x623   : > { %v1093_v57 = vpop.f32.mrb[2].mxu0 }
 0x624   : > { %v2536_v58 = vpop.f32.mrb[3].mxu0  ;;  %v1332_v59 = vsel %vm1331_vm6, %v1093_v57, -inf }
 0x625   : > { %1333 = vmax.xlane.f32.xlu1 %v1332_v59 }
 0x695   : > { %v1171_v60 = vpop.f32.mrb[4].mxu0 }
 0x696   : > { %v2543_v61 = vpop.f32.mrb[5].mxu0  ;;  %v1335_v62 = vsel %vm1331_vm6, %v1171_v60, -inf }
 0x697   : > { %1336 = vmax.xlane.f32.xlu0 %v1335_v62 }
 0x699   : > { %v1249_v63 = vpop.f32.mrb[0].mxu1 }
 0x69a   : > { %v2550_v1 = vpop.f32.mrb[1].mxu1  ;;  %v1338_v2 = vsel %vm1331_vm6, %v1249_v63, -inf }
 0x69b   : > { %1339 = vmax.xlane.f32.xlu1 %v1338_v2 }
 0x69d   : > { %v1327_v3 = vpop.f32.mrb[6].mxu0 }
 0x69e   : > { %v2557_v4 = vpop.f32.mrb[7].mxu0  ;;  %v1341_v5 = vsel %vm1331_vm6, %v1327_v3, -inf }
 0x69f   : > { %1342 = vmax.xlane.f32.xlu1 %v1341_v5 }
 0x6b2   : > { %v1334_v6 = vpop.xlane.xlu1 %1333 }
 0x6b3   : > { %v1344_v8 = vsub.f32 %v1093_v57, %v1334_v6  ;;  %v1678_v57 = vld [vmem:[%s3739_s9 + $0x10] sm:$0xff] }
 0x6b5   : > { %v1348_v9 = vmul.f32 1.442695, %v1344_v8 }
 0x6b7   : > { %2861 = vpow2.f32 %v1348_v9 }
 0x6c1   : > { %v2862_v10 = vpop.eup %2861 }
 0x6c2   : > { %v1356_v11 = vsel %vm1331_vm6, %v2862_v10, 0.0 }
 0x6c3   : > { %1357 = vadd.xlane.f32.xlu1 %v1356_v11 }
 0x724   : > { %v1337_v15 = vpop.xlane.xlu0 %1336 }
 0x725   : > { %v1345_v16 = vsub.f32 %v1171_v60, %v1337_v15  ;;  %v1679_v60 = vld [vmem:[%s3739_s9 + $0x18] sm:$0xff] }
 0x727   : > { %v1350_v18 = vmul.f32 1.442695, %v1345_v16  ;;  %v1989_v16 = vsub.s32 2, %v3485_v26 }
 0x728   : > { %v1340_v19 = vpop.xlane.xlu1 %1339 }
 0x729   : > { %2863 = vpow2.f32 %v1350_v18  ;;  %v1346_v21 = vsub.f32 %v1249_v63, %v1340_v19 }
 0x72b   : > { %v1352_v22 = vmul.f32 1.442695, %v1346_v21 }
 0x72c   : > { %v1343_v23 = vpop.xlane.xlu1 %1342 }
 0x72d   : > { %2865 = vpow2.f32 %v1352_v22  ;;  %v1347_v24 = vsub.f32 %v1327_v3, %v1343_v23  ;;  %v1990_v23 = vrot.slane %v3400_v0, %v1989_v16 }
 0x72f   : > { %v1354_v25 = vmul.f32 1.442695, %v1347_v24 }
 0x731   : > { %2867 = vpow2.f32 %v1354_v25 }
 0x733   : > { %v2864_v28 = vpop.eup %2863 }
 0x734   : > { %v1359_v29 = vsel %vm1331_vm6, %v2864_v28, 0.0 }
 0x735   : > { %1360 = vadd.xlane.f32.xlu1 %v1359_v29 }
 0x737   : > { %v2866_v30 = vpop.eup %2865 }
 0x738   : > { %v1362_v31 = vsel %vm1331_vm6, %v2866_v30, 0.0 }
 0x739   : > { %1363 = vadd.xlane.f32.xlu1 %v1362_v31 }
 0x73b   : > { %v2868_v32 = vpop.eup %2867 }
 0x73c   : > { %v1365_v33 = vsel %vm1331_vm6, %v2868_v32, 0.0 }
 0x73d   : > { %1366 = vadd.xlane.f32.xlu0 %v1365_v33 }
 0x750   : > { %v1358_v37 = vpop.xlane.xlu1 %1357 }
 0x751   : > { %2869 = vrcp.f32 %v1358_v37  ;;  %v2703_v37 = vpack.c.bf16 %v2017_v36, %v2016_v35 }
 0x75b   : > { %v2870_v40 = vpop.eup %2869 }
 0x75c   : > { %v1369_v42 = vmul.f32 %v2870_v40, %v2862_v10  ;;  %v2109_v40 = vld [vmem:[%s3792_s25] sm:$0xff]  ;;  %s2210_s25 = scalar_lea.sflag [#allocation6], %s3799_s21 }
 0x75e   : > { %2563 = vmatmul.mubr.msk.f32.vlgmr.msra.gmra.mrb[8].mxu0 %vm1331_vm6, %v1369_v42 }
 0x75f   : > { %2698 = vmatpush3.bf16.msra.mxu0 %v2697_v41  ;;  %2576 = vmatprep.mubr.msk.f32.mxu0 %vm3111_vm3, %v3112_v20  ;;  %v2110_v41 = vld [vmem:[%s3793_s13 + $0x8] sm:$0xff] }
 0x760   : > { %2586 = vmatprep.subr.mxu0 %v3112_v20  ;;  %v2709_v42 = vpack.c.bf16 %v2110_v41, %v2109_v40 }
 0x7c2   : > { %v1361_v43 = vpop.xlane.xlu1 %1360 }
 0x7c3   : > { %2871 = vrcp.f32 %v1361_v43 }
 0x7c6   : > { %v1364_v44 = vpop.xlane.xlu1 %1363 }
 0x7c7   : > { %2873 = vrcp.f32 %v1364_v44 }
 0x7ca   : > { %v1367_v45 = vpop.xlane.xlu0 %1366 }
 0x7cb   : > { %2875 = vrcp.f32 %v1367_v45 }
 0x7cd   : > { %v2872_v48 = vpop.eup %2871 }
 0x7ce   : > { %v1371_v50 = vmul.f32 %v2872_v48, %v2864_v28  ;;  %v2009_v48 = vrot.slane %v3488_v27, %v2008_v46  ;;  %v2113_v27 = vld [vmem:[%s3793_s13 + $0x20] sm:$0xff] }
 0x7d0   : > { %2570 = vmatmul.mubr.msk.f32.vlgmr.msra.gmra.mrb[2].mxu1 %vm1331_vm6, %v1371_v50 }
 0x7d1   : > { %v2874_v51 = vpop.eup %2873  ;;  %2701 = vmatpush3.bf16.msra.mxu1 %v2700_v49  ;;  %2583 = vmatprep.mubr.msk.f32.mxu1 %vm3111_vm3, %v3112_v20 }
 0x7d2   : > { %v1373_v52 = vmul.f32 %v2874_v51, %v2866_v30  ;;  %2591 = vmatprep.subr.mxu1 %v3112_v20  ;;  %v2014_v51 = vrot.slane %v3400_v0, %v2013_v47 }
 0x7d4   : > { %2577 = vmatmul.mubr.msk.f32.vlgmr.msra.gmra.mrb[10].mxu0 %vm1331_vm6, %v1373_v52 }
 0x7d5   : > { %v2876_v54 = vpop.eup %2875  ;;  %2587 = vmatpush3.msra.mxu0 %v1676_v53  ;;  %2588 = vmatprep.mubr.msk.f32.mxu0 %vm3111_vm3, %v3112_v20 }
 0x7d6   : > { %v1375_v55 = vmul.f32 %v2876_v54, %v2868_v32  ;;  %2596 = vmatprep.subr.mxu0 %v3112_v20  ;;  %v2111_v54 = vld [vmem:[%s3793_s13 + $0x10] sm:$0xff] }
 0x7d8   : > { %2584 = vmatmul.mubr.msk.f32.vlgmr.msra.gmra.mrb[4].mxu1 %vm1331_vm6, %v1375_v55  ;;  %v2112_v55 = vld [vmem:[%s3793_s13 + $0x18] sm:$0xff] }
 0x7d9   : > { %2593 = vmatprep.mubr.msk.f32.mxu1 %vm3111_vm3, %v3112_v20  ;;  %2592 = vmatpush3.msra.mxu1 %v1677_v56  ;;  %v2712_v56 = vpack.c.bf16 %v2112_v55, %v2111_v54 }
 0x7da   : > { %2601 = vmatprep.subr.mxu1 %v3112_v20 }
 0x831   : > { %v1453_v58 = vpop.f32.mrb[8].mxu0 }
 0x832   : > { %v2564_v59 = vpop.f32.mrb[9].mxu0  ;;  %2589 = vmatmul.mubr.msk.f32.vlgmr.msra.gmra.mrb[12].mxu0 %vm1018_vm4, %v1453_v58 }
 0x833   : > { %2597 = vmatpush3.msra.mxu0 %v1678_v57  ;;  %2598 = vmatprep.mubr.msk.f32.mxu0 %vm3111_vm3, %v3112_v20  ;;  %v2114_v57 = vld [vmem:[%s3793_s13 + $0x28] sm:$0xff]  ;;  %v2115_v59 = vld [vmem:[%s3793_s13 + $0x30] sm:$0xff] }
 0x834   : > { %2702 = vmatprep.subr.bf16.mxu0 %v3110_v17  ;;  %v2715_v58 = vpack.c.bf16 %v2114_v57, %v2113_v27 }
 0x8a3   : > { %v1526_v61 = vpop.f32.mrb[2].mxu1 }
 0x8a4   : > { %v2571_v62 = vpop.f32.mrb[3].mxu1  ;;  %2594 = vmatmul.mubr.msk.f32.vlgmr.msra.gmra.mrb[6].mxu1 %vm1018_vm4, %v1526_v61 }
 0x8a5   : > { %2602 = vmatpush3.msra.mxu1 %v1679_v60  ;;  %2603 = vmatprep.mubr.msk.f32.mxu1 %vm3111_vm3, %v3112_v20  ;;  %v2116_v60 = vld [vmem:[%s3793_s13 + $0x38] sm:$0xff]  ;;  %v2117_v62 = vld [vmem:[%s3793_s13 + $0x40] sm:$0xff] }
 0x8a6   : > { %2708 = vmatprep.subr.bf16.mxu1 %v3110_v17  ;;  %v2718_v61 = vpack.c.bf16 %v2116_v60, %v2115_v59 }
 0x8a7   : > { %v1599_v63 = vpop.f32.mrb[10].mxu0 }
 0x8a8   : > { %v2578_v1 = vpop.f32.mrb[11].mxu0  ;;  %2599 = vmatmul.mubr.msk.f32.vlgmr.msra.gmra.mrb[14].mxu0 %vm1018_vm4, %v1599_v63  ;;  %v2118_v63 = vld [vmem:[%s3793_s13 + $0x48] sm:$0xff] }
 0x8a9   : > { %2614 = vmatprep.mubr.msk.f32.mxu0 %vm3111_vm3, %v3112_v20  ;;  %2704 = vmatpush3.bf16.msra.mxu0 %v2703_v37  ;;  %v2721_v1 = vpack.c.bf16 %v2118_v63, %v2117_v62 }
 0x8aa   : > { %2705 = vmatprep.subr.bf16.mxu0 %v3110_v17 }
 0x8ab   : > { %v1672_v2 = vpop.f32.mrb[4].mxu1 }
 0x8ac   : > { %v2585_v3 = vpop.f32.mrb[5].mxu1  ;;  %2604 = vmatmul.mubr.msk.f32.vlgmr.msra.gmra.mrb[8].mxu1 %vm1018_vm4, %v1672_v2  ;;  %v2119_v2 = vld [vmem:[%s3793_s13 + $0x50] sm:$0xff] }
 0x8ad   : > { %2649 = vmatprep.mubr.msk.f32.mxu1 %vm3111_vm3, %v3112_v20  ;;  %v2416_v20 = vld [vmem:[#allocation9] ss:$0 sm:$0xff]  ;;  %2710 = vmatpush3.bf16.msra.mxu1 %v2709_v42  ;;  %v2120_v3 = vld [vmem:[%s3793_s13 + $0x58] sm:$0xff] }
 0x8ae   : > { %2711 = vmatprep.subr.bf16.mxu1 %v3110_v17 }
 0x8b1   : > { %2713 = vmatpush3.bf16.msra.mxu1 %v2712_v56 }
 0x8b2   : > { %2714 = vmatprep.subr.bf16.mxu1 %v3110_v17 }
 0x8b5   : > { %2716 = vmatpush3.bf16.msra.mxu1 %v2715_v58 }
 0x8b6   : > { %2717 = vmatprep.subr.bf16.mxu1 %v3110_v17 }
 0x8b9   : > { %2719 = vmatpush3.bf16.msra.mxu1 %v2718_v61 }
 0x8ba   : > { %2720 = vmatprep.subr.bf16.mxu1 %v3110_v17 }
 0x8bd   : > { %2722 = vmatpush3.bf16.msra.mxu1 %v2721_v1 }
 0x8be   : > { %2723 = vmatprep.subr.bf16.mxu1 %v3110_v17 }
 0x905   : > { %v1749_v4 = vpop.f32.mrb[12].mxu0 }
 0x906   : > { %v2590_v5 = vpop.f32.mrb[13].mxu0  ;;  %v1972_v8 = vsel %vm892_vm2, %v1749_v4, 0.0  ;;  %v2724_v4 = vpack.c.bf16 %v2120_v3, %v2119_v2 }
 0x907   : > { %v2121_v5 = vld [vmem:[%s3793_s13 + $0x60] sm:$0xff] }
 0x908   : > { %2725 = vmatpush3.bf16.msra.mxu1 %v2724_v4 }
 0x909   : > { %2726 = vmatprep.subr.bf16.mxu1 %v3110_v17 }
 0x977   : > { %v1822_v6 = vpop.f32.mrb[6].mxu1 }
 0x978   : > { %v1973_v9 = vsel %vm892_vm2, %v1822_v6, 0.0  ;;  %v2595_v10 = vpop.f32.mrb[7].mxu1  ;;  %v2122_v6 = vld [vmem:[%s3793_s13 + $0x68] sm:$0xff] }
 0x979   : > { %v1974_v11 = vadd.f32 %v1973_v9, %v1972_v8  ;;  %v2727_v8 = vpack.c.bf16 %v2122_v6, %v2121_v5  ;;  %v2123_v9 = vld [vmem:[%s3793_s13 + $0x70] sm:$0xff]  ;;  %v2124_v10 = vld [vmem:[%s3793_s13 + $0x78] sm:$0xff] }
 0x97b   : > { %v1895_v12 = vpop.f32.mrb[14].mxu0  ;;  %2728 = vmatpush3.bf16.msra.mxu1 %v2727_v8 }
 0x97c   : > { %v1975_v13 = vsel %vm892_vm2, %v1895_v12, 0.0  ;;  %v2600_v14 = vpop.f32.mrb[15].mxu0  ;;  %2729 = vmatprep.subr.bf16.mxu1 %v3110_v17  ;;  %v2417_v12 = vld [vmem:[%s3794_s29] ss:$0 sm:$0xff]  ;;  %s3116_s29 = smov [#allocation12]  }
 0x97d   : > { %v1976_v15 = vadd.f32 %v1975_v13, %v1974_v11  ;;  %v2730_v11 = vpack.c.bf16 %v2124_v10, %v2123_v9  ;;  %s2997_s6 = sshll.u32 %s3116_s29, 4  ;;  %s2998_s6 = int_to_ptr.vmem [resolvable:$false] %s2997_s6 }
 0x97e   : > { %s2999_s15 = scalar_lea.vmem %s2998_s6, 256  ;;  %p3000_p6 = scmp.lt.s32.totalorder %s3674_s17, %s2998_s6 }
 0x97f   : > { %v1968_v18 = vpop.f32.mrb[8].mxu1  ;;  %2731 = vmatpush3.bf16.msra.mxu1 %v2730_v11  ;;  %p3001_p7 = scmp.lt.s32.totalorder %s2999_s15, %s2993_s20 }
 0x980   : > { %v1977_v19 = vsel %vm892_vm2, %v1968_v18, 0.0  ;;  %v2605_v21 = vpop.f32.mrb[9].mxu1 }
 0x981   : > { %v1978_v22 = vadd.f32 %v1977_v19, %v1976_v15  ;;  %p3002_p9 = por %p3001_p7, %p3000_p6 }
 0x983   : > { %v1986_v24 = vadd.f32 %v2416_v20, %v1978_v22  ;;  %p3003_p11 = pnand %p3002_p9, %p2996_p5 }
 0x985   : > { %v1991_v25 = vmul.f32 %v1990_v23, %v1986_v24 }
 0x987   : > { %v3589_v28 = vadd.f32 %v1991_v25, %v3459_v7  ;;  %v2018_v7 = vld [vmem:[#allocation10 + $0x10] sm:$0xff]  ;;  %v2204_v25 = vsub.s32 5, %v3485_v26 }
 0x988   : > { %v2706_v39 = vpack.c.bf16 %v2019_v38, %v2018_v7 }
 0x989   : > { %v1993_v29 = vsel %vm892_vm2, %v3589_v28, 0.0 }
 0x98a   : > { %1994 = vadd.xlane.f32.xlu1 %v1993_v29  ;;  %2707 = vmatpush3.bf16.msra.mxu0 %v2706_v39  ;;  %v2419_v29 = vld [vmem:[%s3795_s14] ss:$0 sm:$0xff] }
 0xa17   : > { %v1995_v30 = vpop.xlane.xlu1 %1994 }
 0xa18   : > { %v1996_v31 = vmul.f32 0.03125, %v1995_v30  ;;  %v2205_v30 = vrot.slane %v3400_v0, %v2204_v25 }
 0xa1a   : > { %v1997_v32 = vsub.f32 %v3589_v28, %v1996_v31 }
 0xa1c   : > { %v1998_v33 = vmul.f32 %v1997_v32, %v1997_v32 }
 0xa1e   : > { %v1999_v34 = vsel %vm892_vm2, %v1998_v33, 0.0 }
 0xa1f   : > { %2000 = vadd.xlane.f32.xlu0 %v1999_v34 }
 0xaac   : > { %v2001_v43 = vpop.xlane.xlu0 %2000 }
 0xaad   : > { %v2002_v44 = vmul.f32 0.03125, %v2001_v43 }
 0xaaf   : > { %v2003_v45 = vadd.f32 1e-06, %v2002_v44 }
 0xab1   : > { %2877 = vrsqrt.f32 %v2003_v45 }
 0xabb   : > { %v2878_v49 = vpop.eup %2877 }
 0xabc   : > { %v2005_v50 = vmul.f32 %v2878_v49, %v1997_v32 }
 0xabe   : > { %v2010_v52 = vmul.f32 %v2009_v48, %v2005_v50 }
 0xac0   : > { %v2015_v53 = vadd.f32 %v2014_v51, %v2010_v52 }
 0xac2   : > { %2615 = vmatmul.mubr.msk.f32.vlgmr.msra.gmra.mrb[16].mxu0 %vm892_vm2, %v2015_v53 }
 0xb95   : > { %v2096_v13 = vpop.f32.mrb[16].mxu0 }
 0xb96   : > { %v2097_v14 = vadd.f32 %v2417_v12, %v2096_v13  ;;  %v2616_v15 = vpop.f32.mrb[17].mxu0 }
 0xb98   : > { %v2101_v16 = vmul.f32 0.044715, %v2097_v14  ;;  %v2100_v23 = vmul.f32 0.5, %v2097_v14 }
 0xb9a   : > { %v2102_v18 = vmul.f32 %v2101_v16, %v2097_v14 }
 0xb9c   : > { %v2103_v19 = vmul.f32 %v2102_v18, %v2097_v14 }
 0xb9e   : > { %v2104_v20 = vadd.f32 %v2103_v19, %v2097_v14 }
 0xba0   : > { %v2105_v21 = vmul.f32 0.7978846, %v2104_v20 }
 0xba2   : > { %2879 = vtanh.f32 %v2105_v21 }
 0xbac   : > { %v2880_v22 = vpop.eup %2879 }
 0xbad   : > { %v2107_v17 = vadd.f32 1.0, %v2880_v22 }
 0xbaf   : > { %v2108_v24 = vmul.f32 %v2107_v17, %v2100_v23 }
 0xbb1   : > { %2650 = vmatmul.mubr.f32.vlgmr.msra.gmra.mrb[10].mxu1 %v2108_v24 }
 0xc84   : > { %v2198_v31 = vpop.f32.mrb[10].mxu1 }
 0xc85   : > { %v2199_v32 = vadd.f32 %v2419_v29, %v2198_v31  ;;  %v2651_v33 = vpop.f32.mrb[11].mxu1 }
 0xc87   : > { %v2206_v34 = vmul.f32 %v2205_v30, %v2199_v32 }
 0xc89   : > { %v2207_v35 = vadd.f32 %v2206_v34, %v3589_v28 }
 0xc8b   : > { %2208 = vst.msk [vmem:[%s590_s30] sm:$0xff] %vm892_vm2, %v2207_v35 }
 0xc8c   : > { %3006 = shalt.err (!%p3003_p11)
}
 0xc8d   : > { %s3007_s8 = scalar_lea.hbm %s3672_s23, 128  ;;  %s3011_s14 = scalar_lea.hbm %s3798_s27, 512 }
 0xc8e   : > { %p3008_p13 = scmp.ne.s32.totalorder %s3672_s23, %s3007_s8  ;;  %p3012_p0 = scmp.lt.u32.totalorder %s3672_s23, %s3798_s27 }
 0xc8f   : > { %p3013_p2 = scmp.lt.u32.totalorder %s3011_s14, %s3007_s8  ;;  %p3015_p12 = scmp.lt.u32.totalorder %s3007_s8, %s3672_s23 }
 0xc90   : > { %p3009_p3 = pnand %p3008_p13, %p3800_p1 }
 0xc91   : > { %p3014_p10 = por %p3013_p2, %p3012_p0 }
 0xc92   : > { %p3010_p8 = pneg %p3009_p3 }
 0xc93   : > { %p3016_p4 = por %p3015_p12, %p3014_p10 }
 0xc95   : > { %p3017_p5 = pnand %p3016_p4, %p3010_p8 }
 0xc97   : > { %3020 = shalt.err (!%p3017_p5)
}
 0xc98   : > { %2748 = dma.vmem_to_hbm [thread:$0]  (%p3800_p1), %s3674_s17, 128, %s3672_s23, %s2210_s25  }
 0xc99 PF: > { %s3801_s12 = sld [smem:[#allocation21_spill]]  ;;  %s3802_s26 = sld [smem:[#allocation17_spill]] }
 0xc9a   : > { %s3803_s22 = sld [smem:[#allocation25_spill]] }
 0xc9f   : > { %p2775_p6 = scmp.ge.s32.totalorder %s3801_s12, 2  ;;  %s2237_s21 = sand.u32 1, %s3802_s26  }
 0xca0   : > { %p3804_p7 = scmp.ne.s32.totalorder %s3803_s22, 0  ;;  %s2238_s20 = scalar_lea.sflag [#allocation6], %s2237_s21 }
 0xca2   : > { %p2764_p9 = pnand %p2775_p6, %p3804_p7 }
 0xca4   : > { %3066 = dma.done.wait (!%p2764_p9), %s2238_s20, 128  }
 0xca5   : > { %3068 = vsyncadd (!%p2764_p9), %s2238_s20, 4294967168  ;;  %s31_s25 = sadd.s32 1, %s3801_s12   ;;  %s3805_s29 = sld [smem:[#allocation18_spill]] }
 0xca6   : > { %p28_p11 = scmp.ge.s32.totalorder %s31_s25, 6   ;;  %s3806_s20 = sld [smem:[#allocation26_spill]] }
 0xca7   : > { %s3807_s21 = sld [smem:[#allocation19_spill]]  ;;  %s3808_s22 = sld [smem:[#allocation20_spill]] }
 0xca8   : > { %s3809_s23 = sld [smem:[#allocation22_spill]]  ;;  %s3810_s24 = sld [smem:[#allocation24_spill]] }
 0xca9   : > { %s3811_s18 = smov %s3075_s19  ;;  %30 = sbr.rel (!%p28_p11) target bundleno = 15 (0xf), region = 142 }
 0xcab   : > { %s3812_s19 = smov %s3805_s29 }
 0xcb0   :  { %2243 = vsyncpa [#allocation5], 1 }
 0xcb1   :  { %2245 = vsyncpa [#allocation5 + $0x1], 1 }
 0xcb2   :  { %2246 = vsyncpa [#allocation8], 1 }
 0xcb3   :  { %2247 = vsyncpa [#allocation11], 1 }
 0xcb4   :  { %2248 = vsyncpa [#allocation6], 1 }
 0xcb5   :  { %2250 = vsyncpa [#allocation6 + $0x1], 1 }

</bundles_post_ra>
